<compile_context>
chip_gen: v5e
topology: v5e:2x2
jax: 0.10.0
libtpu: 0.0.40
codegen_flags: <defaults>
</compile_context>

<pallas_src>
import math

import jax
import jax.numpy as jnp
from jax.experimental import pallas as pl
from jax.experimental.pallas import tpu as pltpu

# ---- model hyper-parameters (small, consistent with the module) ----
N = 2            # batch
T = 8            # target sequence length
S = 8            # source (memory) sequence length
EMBED = 32       # input_dim
NUM_HEADS = 2
HEAD_DIM = EMBED // NUM_HEADS
FFN = 64         # dim_feedforward
LN_EPS = 1e-5
NEG_INF = -1e9   # finite additive mask value (NaN-safe)
SLAB_W = 128     # parameter slab lane width (one vreg lane tile)


# --------------------------- host-side parameter prep ---------------------------
def prepare_kernel_params(params, tgt_mask):
    """One-time host-side fusion (hoisted out of the forward path):
       * fold softmax scale into Wq / bq,
       * fuse K/V projections into one (E, 2*H*E) matrix with each head at
         full EMBED width and the other heads' columns zeroed,
       * convert the 0/1 mask into an additive (0 / -1e9) mask,
       * pack everything into a single (rows, 128) f32 slab with 8-row-aligned
         static offsets.
    Returns (slab, layout) where layout[name] = (row_offset, nrows, ncols)."""
    (sa_w, sa_b, ca_w, ca_b, w1, b1, w2, b2, ln_g, ln_b) = params
    scale = 1.0 / math.sqrt(HEAD_DIM)

    def head_mask(h):
        m = jnp.zeros((EMBED,), jnp.float32)
        return m.at[h * HEAD_DIM:(h + 1) * HEAD_DIM].set(1.0)

    def fused_kv(wk, bk, wv, bv):
        # [K_0 | .. | K_{H-1} | V_0 | .. | V_{H-1}], each head full EMBED wide.
        wcols, bcols = [], []
        for w_, b_ in ((wk, bk), (wv, bv)):
            for h in range(NUM_HEADS):
                m = head_mask(h)
                wcols.append(w_ * m[None, :])
                bcols.append(b_ * m)
        return jnp.concatenate(wcols, axis=1), jnp.concatenate(bcols)[None, :]

    sa_kv_w, sa_kv_b = fused_kv(sa_w[1], sa_b[1], sa_w[2], sa_b[2])
    ca_kv_w, ca_kv_b = fused_kv(ca_w[1], ca_b[1], ca_w[2], ca_b[2])
    add_mask = jnp.where(tgt_mask == 0, NEG_INF, 0.0).astype(jnp.float32)

    entries = [
        ("sa_q_w", sa_w[0] * scale), ("sa_q_b", (sa_b[0] * scale)[None, :]),
        ("sa_kv_w", sa_kv_w),        ("sa_kv_b", sa_kv_b),
        ("sa_o_w", sa_w[3]),         ("sa_o_b", sa_b[3][None, :]),
        ("ca_q_w", ca_w[0] * scale), ("ca_q_b", (ca_b[0] * scale)[None, :]),
        ("ca_kv_w", ca_kv_w),        ("ca_kv_b", ca_kv_b),
        ("ca_o_w", ca_w[3]),         ("ca_o_b", ca_b[3][None, :]),
        ("w1", w1), ("b1", b1), ("w2", w2), ("b2", b2),
        ("ln_g", ln_g), ("ln_b", ln_b),
        ("mask", add_mask),
    ]

    layout, blocks, row = {}, [], 0
    for name, a in entries:
        a = jnp.asarray(a, jnp.float32)
        h, w = a.shape
        assert w <= SLAB_W, name
        hp = -(-h // 8) * 8                       # pad rows to a multiple of 8
        blocks.append(jnp.zeros((hp, SLAB_W), jnp.float32).at[:h, :w].set(a))
        layout[name] = (row, h, w)
        row += hp
    slab = jnp.concatenate(blocks, axis=0)        # (376, 128) ~ 190 KiB
    return slab, layout


# --------------------------------- the kernel ---------------------------------
def _make_kernel(layout):
    def param(slab_ref, name):
        r, h, w = layout[name]
        return slab_ref[r:r + h, 0:w]             # static, 8-aligned row slice

    def layernorm(x, g, b):
        mu = jnp.mean(x, axis=-1, keepdims=True)
        d = x - mu
        var = jnp.mean(d * d, axis=-1, keepdims=True)
        return d * jax.lax.rsqrt(var + LN_EPS) * g + b

    def attn(q, khv, add_mask):
        """q: (R, E), already scaled.  khv: (Rk, 2*H*E) = [K_0..|V_0..], each
        head full EMBED wide with other heads' columns zeroed.  Heads are
        statically unrolled (independent MXU/VPU/EUP chains)."""
        y = None
        for h in range(NUM_HEADS):
            kh = khv[:, h * EMBED:(h + 1) * EMBED]
            vh = khv[:, (NUM_HEADS + h) * EMBED:(NUM_HEADS + h + 1) * EMBED]
            s = jax.lax.dot_general(q, kh, (((1,), (1,)), ((), ())),
                                    preferred_element_type=jnp.float32)
            if add_mask is not None:
                s = s + add_mask
            s = s - jnp.max(s, axis=-1, keepdims=True)
            e = jnp.exp(s)
            denom = jnp.sum(e, axis=-1, keepdims=True)
            inv = pl.reciprocal(denom, approx=True)    # EUP slot (off VPU path)
            inv = inv * (2.0 - denom * inv)            # 1 Newton step -> full precision
            o = jnp.dot(e, vh, preferred_element_type=jnp.float32) * inv
            y = o if y is None else y + o              # heads occupy disjoint cols
        return y

    def kernel(x_ref, mem_ref, slab_ref, out_ref):
        P = lambda name: param(slab_ref, name)
        x = x_ref[...]                       # (N*T, E) f32
        mem = mem_ref[...]                   # (N*S, E) f32
        add_mask = P("mask")                 # (T, T) additive 0 / -1e9
        ln_g = P("ln_g")                     # (3, E)
        ln_b = P("ln_b")                     # (3, E)

        # Cross-attn K/V depends only on memory -> issued first so the
        # scheduler can overlap it with the self-attention chain.
        ca_kv = jnp.dot(mem, P("ca_kv_w"),
                        preferred_element_type=jnp.float32) + P("ca_kv_b")

        # ---- self attention + residual + LN1 ----
        q = jnp.dot(x, P("sa_q_w"),
                    preferred_element_type=jnp.float32) + P("sa_q_b")
        kv = jnp.dot(x, P("sa_kv_w"),
                     preferred_element_type=jnp.float32) + P("sa_kv_b")
        y = jnp.concatenate(
            [attn(q[b * T:(b + 1) * T, :], kv[b * T:(b + 1) * T, :], add_mask)
             for b in range(N)], axis=0)
        t2 = jnp.dot(y, P("sa_o_w"),
                     preferred_element_type=jnp.float32) + P("sa_o_b")
        x = layernorm(x + t2, ln_g[0:1, :], ln_b[0:1, :])

        # ---- cross attention (memory K/V) + residual + LN2 ----
        q = jnp.dot(x, P("ca_q_w"),
                    preferred_element_type=jnp.float32) + P("ca_q_b")
        y = jnp.concatenate(
            [attn(q[b * T:(b + 1) * T, :], ca_kv[b * S:(b + 1) * S, :], None)
             for b in range(N)], axis=0)
        t2 = jnp.dot(y, P("ca_o_w"),
                     preferred_element_type=jnp.float32) + P("ca_o_b")
        x = layernorm(x + t2, ln_g[1:2, :], ln_b[1:2, :])

        # ---- feed forward + residual + LN3 ----
        hdn = jnp.maximum(
            jnp.dot(x, P("w1"), preferred_element_type=jnp.float32) + P("b1"),
            0.0)
        t2 = jnp.dot(hdn, P("w2"),
                     preferred_element_type=jnp.float32) + P("b2")
        x = layernorm(x + t2, ln_g[2:3, :], ln_b[2:3, :])

        out_ref[...] = x.astype(out_ref.dtype)

    return kernel


def transformer_decoder_layer(tgt, memory, prepared):
    """tgt: (N, T, E) f32, memory: (N, S, E) f32.
    prepared = prepare_kernel_params(params, tgt_mask), computed once."""
    slab, layout = prepared
    x2d = tgt.reshape(N * T, EMBED)
    m2d = memory.reshape(N * S, EMBED)
    vmem = lambda: pl.BlockSpec(memory_space=pltpu.MemorySpace.VMEM)
    out2d = pl.pallas_call(
        _make_kernel(layout),
        out_shape=jax.ShapeDtypeStruct((N * T, EMBED), jnp.float32),
        in_specs=[vmem(), vmem(), vmem()],
        out_specs=vmem(),
    )(x2d, m2d, slab)
    return out2d.reshape(N, T, EMBED)


# ---------------- pure-JAX reference (independent of kernel helpers) ----------------
def reference_forward(tgt, memory, tgt_mask, params):
    (sa_w, sa_b, ca_w, ca_b, w1, b1, w2, b2, ln_g, ln_b) = params

    def layernorm(x, g, b):
        mu = x.mean(-1, keepdims=True)
        var = ((x - mu) ** 2).mean(-1, keepdims=True)
        return (x - mu) / jnp.sqrt(var + LN_EPS) * g + b

    def mha(q_in, kv_in, w, bias, mask):
        q = q_in @ w[0] + bias[0]
        k = kv_in @ w[1] + bias[1]
        v = kv_in @ w[2] + bias[2]
        Nb, Tq, _ = q_in.shape
        Tk = kv_in.shape[1]
        q = q.reshape(Nb, Tq, NUM_HEADS, HEAD_DIM)
        k = k.reshape(Nb, Tk, NUM_HEADS, HEAD_DIM)
        v = v.reshape(Nb, Tk, NUM_HEADS, HEAD_DIM)
        scores = jnp.einsum('nqhd,nkhd->nhqk', q, k) / math.sqrt(HEAD_DIM)
        if mask is not None:
            scores = jnp.where(mask[None, None, :, :] == 0, -jnp.inf, scores)
        p = jax.nn.softmax(scores, axis=-1)
        y = jnp.einsum('nhqk,nkhd->nqhd', p, v).reshape(Nb, Tq, EMBED)
        return y @ w[3] + bias[3]

    x = tgt
    x = layernorm(x + mha(x, x, sa_w, sa_b, tgt_mask), ln_g[0], ln_b[0])
    x = layernorm(x + mha(x, memory, ca_w, ca_b, None), ln_g[1], ln_b[1])
    h = jnp.maximum(x @ w1 + b1[0], 0.0)
    x = layernorm(x + (h @ w2 + b2[0]), ln_g[2], ln_b[2])
    return x


if __name__ == "__main__":
    key = jax.random.PRNGKey(0)
    keys = jax.random.split(key, 12)

    tgt = jax.random.normal(keys[0], (N, T, EMBED), jnp.float32)
    memory = jax.random.normal(keys[1], (N, S, EMBED), jnp.float32)
    # causal target mask: token i attends only to j <= i
    tgt_mask = jnp.tril(jnp.ones((T, T), jnp.float32))

    scale = 0.1
    # weights stored pre-transposed as (in, out): y = x @ W + b; index 0=Q,1=K,2=V,3=out
    sa_w = scale * jax.random.normal(keys[2], (4, EMBED, EMBED), jnp.float32)
    sa_b = scale * jax.random.normal(keys[3], (4, EMBED), jnp.float32)
    ca_w = scale * jax.random.normal(keys[4], (4, EMBED, EMBED), jnp.float32)
    ca_b = scale * jax.random.normal(keys[5], (4, EMBED), jnp.float32)
    w1 = scale * jax.random.normal(keys[6], (EMBED, FFN), jnp.float32)
    b1 = scale * jax.random.normal(keys[7], (1, FFN), jnp.float32)
    w2 = scale * jax.random.normal(keys[8], (FFN, EMBED), jnp.float32)
    b2 = scale * jax.random.normal(keys[9], (1, EMBED), jnp.float32)
    ln_g = 1.0 + scale * jax.random.normal(keys[10], (3, EMBED), jnp.float32)
    ln_b = scale * jax.random.normal(keys[11], (3, EMBED), jnp.float32)

    params = (sa_w, sa_b, ca_w, ca_b, w1, b1, w2, b2, ln_g, ln_b)

    # Parameter prep is hoisted out of the per-call path: done exactly once.
    prepared = prepare_kernel_params(params, tgt_mask)

    out = transformer_decoder_layer(tgt, memory, prepared)
    out = jax.block_until_ready(out)

    ref = reference_forward(tgt, memory, tgt_mask, params)
    assert out.shape == (N, T, EMBED)
    assert jnp.allclose(out, ref, atol=2e-4, rtol=2e-4), \
        f"max err {jnp.max(jnp.abs(out - ref))}"

    print("KERNEL_OK")
</pallas_src>

<mosaic_0001>
module attributes {stable_mosaic.version = 11 : i64} {
  func.func @kernel(%arg0: memref<16x32xf32, #tpu.memory_space<vmem>>, %arg1: memref<16x32xf32, #tpu.memory_space<vmem>>, %arg2: memref<376x128xf32, #tpu.memory_space<vmem>>, %arg3: memref<16x32xf32, #tpu.memory_space<vmem>>) attributes {dimension_semantics = [], scalar_prefetch = 0 : i64, scratch_operands = 0 : i64, tpu.core_type = #tpu.core_type<tc>} {
    %c0 = arith.constant 0 : index
    %c0_0 = arith.constant 0 : index
    %0 = vector.load %arg0[%c0, %c0_0] : memref<16x32xf32, #tpu.memory_space<vmem>>, vector<16x32xf32>
    %c0_1 = arith.constant 0 : index
    %c0_2 = arith.constant 0 : index
    %1 = vector.load %arg1[%c0_1, %c0_2] : memref<16x32xf32, #tpu.memory_space<vmem>>, vector<16x32xf32>
    %c368 = arith.constant 368 : index
    %c0_3 = arith.constant 0 : index
    %2 = vector.load %arg2[%c368, %c0_3] : memref<376x128xf32, #tpu.memory_space<vmem>>, vector<8x8xf32>
    %c352 = arith.constant 352 : index
    %c0_4 = arith.constant 0 : index
    %3 = vector.load %arg2[%c352, %c0_4] : memref<376x128xf32, #tpu.memory_space<vmem>>, vector<3x32xf32>
    %c360 = arith.constant 360 : index
    %c0_5 = arith.constant 0 : index
    %4 = vector.load %arg2[%c360, %c0_5] : memref<376x128xf32, #tpu.memory_space<vmem>>, vector<3x32xf32>
    %c160 = arith.constant 160 : index
    %c0_6 = arith.constant 0 : index
    %5 = vector.load %arg2[%c160, %c0_6] : memref<376x128xf32, #tpu.memory_space<vmem>>, vector<32x128xf32>
    %cst = arith.constant dense<0.000000e+00> : vector<16x128xf32>
    %6 = tpu.matmul %1, %5, %cst {dimension_numbers = #tpu.dot_dimension_numbers<[1], [0], [0], [1], [0, 0, 1, 1], [], []>} : vector<16x32xf32>, vector<32x128xf32>, vector<16x128xf32> -> vector<16x128xf32>
    %c192 = arith.constant 192 : index
    %c0_7 = arith.constant 0 : index
    %7 = vector.load %arg2[%c192, %c0_7] : memref<376x128xf32, #tpu.memory_space<vmem>>, vector<1x128xf32>
    %8 = vector.broadcast %7 : vector<1x128xf32> to vector<16x128xf32>
    %9 = arith.addf %6, %8 : vector<16x128xf32>
    %c0_8 = arith.constant 0 : index
    %c0_9 = arith.constant 0 : index
    %10 = vector.load %arg2[%c0_8, %c0_9] : memref<376x128xf32, #tpu.memory_space<vmem>>, vector<32x32xf32>
    %cst_10 = arith.constant dense<0.000000e+00> : vector<16x32xf32>
    %11 = tpu.matmul %0, %10, %cst_10 {dimension_numbers = #tpu.dot_dimension_numbers<[1], [0], [0], [1], [0, 0, 1, 1], [], []>} : vector<16x32xf32>, vector<32x32xf32>, vector<16x32xf32> -> vector<16x32xf32>
    %c32 = arith.constant 32 : index
    %c0_11 = arith.constant 0 : index
    %12 = vector.load %arg2[%c32, %c0_11] : memref<376x128xf32, #tpu.memory_space<vmem>>, vector<1x32xf32>
    %13 = vector.broadcast %12 : vector<1x32xf32> to vector<16x32xf32>
    %14 = arith.addf %11, %13 : vector<16x32xf32>
    %c40 = arith.constant 40 : index
    %c0_12 = arith.constant 0 : index
    %15 = vector.load %arg2[%c40, %c0_12] : memref<376x128xf32, #tpu.memory_space<vmem>>, vector<32x128xf32>
    %cst_13 = arith.constant dense<0.000000e+00> : vector<16x128xf32>
    %16 = tpu.matmul %0, %15, %cst_13 {dimension_numbers = #tpu.dot_dimension_numbers<[1], [0], [0], [1], [0, 0, 1, 1], [], []>} : vector<16x32xf32>, vector<32x128xf32>, vector<16x128xf32> -> vector<16x128xf32>
    %c72 = arith.constant 72 : index
    %c0_14 = arith.constant 0 : index
    %17 = vector.load %arg2[%c72, %c0_14] : memref<376x128xf32, #tpu.memory_space<vmem>>, vector<1x128xf32>
    %18 = vector.broadcast %17 : vector<1x128xf32> to vector<16x128xf32>
    %19 = arith.addf %16, %18 : vector<16x128xf32>
    %20 = vector.extract_strided_slice %14 {offsets = [0, 0], sizes = [8, 32], strides = [1, 1]} : vector<16x32xf32> to vector<8x32xf32>
    %21 = vector.extract_strided_slice %19 {offsets = [0, 0], sizes = [8, 128], strides = [1, 1]} : vector<16x128xf32> to vector<8x128xf32>
    %22 = vector.extract_strided_slice %21 {offsets = [0, 0], sizes = [8, 32], strides = [1, 1]} : vector<8x128xf32> to vector<8x32xf32>
    %23 = vector.extract_strided_slice %21 {offsets = [0, 64], sizes = [8, 32], strides = [1, 1]} : vector<8x128xf32> to vector<8x32xf32>
    %cst_15 = arith.constant dense<0.000000e+00> : vector<8x8xf32>
    %24 = tpu.matmul %20, %22, %cst_15 {dimension_numbers = #tpu.dot_dimension_numbers<[1], [1], [0], [0], [0, 0, 1, 0], [], []>} : vector<8x32xf32>, vector<8x32xf32>, vector<8x8xf32> -> vector<8x8xf32>
    %25 = arith.addf %24, %2 : vector<8x8xf32>
    %cst_16 = arith.constant dense<0xFF800000> : vector<8xf32>
    %26 = vector.multi_reduction <maximumf>, %25, %cst_16 [1] : vector<8x8xf32> to vector<8xf32>
    %27 = vector.shape_cast %26 : vector<8xf32> to vector<8x1xf32>
    %28 = vector.broadcast %27 : vector<8x1xf32> to vector<8x8xf32>
    %29 = arith.subf %25, %28 : vector<8x8xf32>
    %30 = math.exp %29 : vector<8x8xf32>
    %cst_17 = arith.constant dense<0.000000e+00> : vector<8xf32>
    %31 = vector.multi_reduction <add>, %30, %cst_17 [1] : vector<8x8xf32> to vector<8xf32>
    %32 = vector.shape_cast %31 : vector<8xf32> to vector<8x1xf32>
    %33 = tpu.reciprocal %32 {approx = true} : vector<8x1xf32> -> vector<8x1xf32>
    %34 = arith.mulf %32, %33 : vector<8x1xf32>
    %cst_18 = arith.constant 2.000000e+00 : f32
    %35 = vector.broadcast %cst_18 : f32 to vector<8x1xf32>
    %36 = arith.subf %35, %34 : vector<8x1xf32>
    %37 = arith.mulf %33, %36 : vector<8x1xf32>
    %cst_19 = arith.constant dense<0.000000e+00> : vector<8x32xf32>
    %38 = tpu.matmul %30, %23, %cst_19 {dimension_numbers = #tpu.dot_dimension_numbers<[1], [0], [0], [1], [0, 0, 1, 1], [], []>} : vector<8x8xf32>, vector<8x32xf32>, vector<8x32xf32> -> vector<8x32xf32>
    %39 = vector.broadcast %37 : vector<8x1xf32> to vector<8x32xf32>
    %40 = arith.mulf %38, %39 : vector<8x32xf32>
    %41 = vector.extract_strided_slice %21 {offsets = [0, 32], sizes = [8, 32], strides = [1, 1]} : vector<8x128xf32> to vector<8x32xf32>
    %42 = vector.extract_strided_slice %21 {offsets = [0, 96], sizes = [8, 32], strides = [1, 1]} : vector<8x128xf32> to vector<8x32xf32>
    %cst_20 = arith.constant dense<0.000000e+00> : vector<8x8xf32>
    %43 = tpu.matmul %20, %41, %cst_20 {dimension_numbers = #tpu.dot_dimension_numbers<[1], [1], [0], [0], [0, 0, 1, 0], [], []>} : vector<8x32xf32>, vector<8x32xf32>, vector<8x8xf32> -> vector<8x8xf32>
    %44 = arith.addf %43, %2 : vector<8x8xf32>
    %cst_21 = arith.constant dense<0xFF800000> : vector<8xf32>
    %45 = vector.multi_reduction <maximumf>, %44, %cst_21 [1] : vector<8x8xf32> to vector<8xf32>
    %46 = vector.shape_cast %45 : vector<8xf32> to vector<8x1xf32>
    %47 = vector.broadcast %46 : vector<8x1xf32> to vector<8x8xf32>
    %48 = arith.subf %44, %47 : vector<8x8xf32>
    %49 = math.exp %48 : vector<8x8xf32>
    %cst_22 = arith.constant dense<0.000000e+00> : vector<8xf32>
    %50 = vector.multi_reduction <add>, %49, %cst_22 [1] : vector<8x8xf32> to vector<8xf32>
    %51 = vector.shape_cast %50 : vector<8xf32> to vector<8x1xf32>
    %52 = tpu.reciprocal %51 {approx = true} : vector<8x1xf32> -> vector<8x1xf32>
    %53 = arith.mulf %51, %52 : vector<8x1xf32>
    %cst_23 = arith.constant 2.000000e+00 : f32
    %54 = vector.broadcast %cst_23 : f32 to vector<8x1xf32>
    %55 = arith.subf %54, %53 : vector<8x1xf32>
    %56 = arith.mulf %52, %55 : vector<8x1xf32>
    %cst_24 = arith.constant dense<0.000000e+00> : vector<8x32xf32>
    %57 = tpu.matmul %49, %42, %cst_24 {dimension_numbers = #tpu.dot_dimension_numbers<[1], [0], [0], [1], [0, 0, 1, 1], [], []>} : vector<8x8xf32>, vector<8x32xf32>, vector<8x32xf32> -> vector<8x32xf32>
    %58 = vector.broadcast %56 : vector<8x1xf32> to vector<8x32xf32>
    %59 = arith.mulf %57, %58 : vector<8x32xf32>
    %60 = arith.addf %40, %59 : vector<8x32xf32>
    %61 = vector.extract_strided_slice %14 {offsets = [8, 0], sizes = [8, 32], strides = [1, 1]} : vector<16x32xf32> to vector<8x32xf32>
    %62 = vector.extract_strided_slice %19 {offsets = [8, 0], sizes = [8, 128], strides = [1, 1]} : vector<16x128xf32> to vector<8x128xf32>
    %63 = vector.extract_strided_slice %62 {offsets = [0, 0], sizes = [8, 32], strides = [1, 1]} : vector<8x128xf32> to vector<8x32xf32>
    %64 = vector.extract_strided_slice %62 {offsets = [0, 64], sizes = [8, 32], strides = [1, 1]} : vector<8x128xf32> to vector<8x32xf32>
    %cst_25 = arith.constant dense<0.000000e+00> : vector<8x8xf32>
    %65 = tpu.matmul %61, %63, %cst_25 {dimension_numbers = #tpu.dot_dimension_numbers<[1], [1], [0], [0], [0, 0, 1, 0], [], []>} : vector<8x32xf32>, vector<8x32xf32>, vector<8x8xf32> -> vector<8x8xf32>
    %66 = arith.addf %65, %2 : vector<8x8xf32>
    %cst_26 = arith.constant dense<0xFF800000> : vector<8xf32>
    %67 = vector.multi_reduction <maximumf>, %66, %cst_26 [1] : vector<8x8xf32> to vector<8xf32>
    %68 = vector.shape_cast %67 : vector<8xf32> to vector<8x1xf32>
    %69 = vector.broadcast %68 : vector<8x1xf32> to vector<8x8xf32>
    %70 = arith.subf %66, %69 : vector<8x8xf32>
    %71 = math.exp %70 : vector<8x8xf32>
    %cst_27 = arith.constant dense<0.000000e+00> : vector<8xf32>
    %72 = vector.multi_reduction <add>, %71, %cst_27 [1] : vector<8x8xf32> to vector<8xf32>
    %73 = vector.shape_cast %72 : vector<8xf32> to vector<8x1xf32>
    %74 = tpu.reciprocal %73 {approx = true} : vector<8x1xf32> -> vector<8x1xf32>
    %75 = arith.mulf %73, %74 : vector<8x1xf32>
    %cst_28 = arith.constant 2.000000e+00 : f32
    %76 = vector.broadcast %cst_28 : f32 to vector<8x1xf32>
    %77 = arith.subf %76, %75 : vector<8x1xf32>
    %78 = arith.mulf %74, %77 : vector<8x1xf32>
    %cst_29 = arith.constant dense<0.000000e+00> : vector<8x32xf32>
    %79 = tpu.matmul %71, %64, %cst_29 {dimension_numbers = #tpu.dot_dimension_numbers<[1], [0], [0], [1], [0, 0, 1, 1], [], []>} : vector<8x8xf32>, vector<8x32xf32>, vector<8x32xf32> -> vector<8x32xf32>
    %80 = vector.broadcast %78 : vector<8x1xf32> to vector<8x32xf32>
    %81 = arith.mulf %79, %80 : vector<8x32xf32>
    %82 = vector.extract_strided_slice %62 {offsets = [0, 32], sizes = [8, 32], strides = [1, 1]} : vector<8x128xf32> to vector<8x32xf32>
    %83 = vector.extract_strided_slice %62 {offsets = [0, 96], sizes = [8, 32], strides = [1, 1]} : vector<8x128xf32> to vector<8x32xf32>
    %cst_30 = arith.constant dense<0.000000e+00> : vector<8x8xf32>
    %84 = tpu.matmul %61, %82, %cst_30 {dimension_numbers = #tpu.dot_dimension_numbers<[1], [1], [0], [0], [0, 0, 1, 0], [], []>} : vector<8x32xf32>, vector<8x32xf32>, vector<8x8xf32> -> vector<8x8xf32>
    %85 = arith.addf %84, %2 : vector<8x8xf32>
    %cst_31 = arith.constant dense<0xFF800000> : vector<8xf32>
    %86 = vector.multi_reduction <maximumf>, %85, %cst_31 [1] : vector<8x8xf32> to vector<8xf32>
    %87 = vector.shape_cast %86 : vector<8xf32> to vector<8x1xf32>
    %88 = vector.broadcast %87 : vector<8x1xf32> to vector<8x8xf32>
    %89 = arith.subf %85, %88 : vector<8x8xf32>
    %90 = math.exp %89 : vector<8x8xf32>
    %cst_32 = arith.constant dense<0.000000e+00> : vector<8xf32>
    %91 = vector.multi_reduction <add>, %90, %cst_32 [1] : vector<8x8xf32> to vector<8xf32>
    %92 = vector.shape_cast %91 : vector<8xf32> to vector<8x1xf32>
    %93 = tpu.reciprocal %92 {approx = true} : vector<8x1xf32> -> vector<8x1xf32>
    %94 = arith.mulf %92, %93 : vector<8x1xf32>
    %cst_33 = arith.constant 2.000000e+00 : f32
    %95 = vector.broadcast %cst_33 : f32 to vector<8x1xf32>
    %96 = arith.subf %95, %94 : vector<8x1xf32>
    %97 = arith.mulf %93, %96 : vector<8x1xf32>
    %cst_34 = arith.constant dense<0.000000e+00> : vector<8x32xf32>
    %98 = tpu.matmul %90, %83, %cst_34 {dimension_numbers = #tpu.dot_dimension_numbers<[1], [0], [0], [1], [0, 0, 1, 1], [], []>} : vector<8x8xf32>, vector<8x32xf32>, vector<8x32xf32> -> vector<8x32xf32>
    %99 = vector.broadcast %97 : vector<8x1xf32> to vector<8x32xf32>
    %100 = arith.mulf %98, %99 : vector<8x32xf32>
    %101 = arith.addf %81, %100 : vector<8x32xf32>
    %102 = tpu.concatenate %60, %101 in 0 : vector<8x32xf32>, vector<8x32xf32> -> vector<16x32xf32>
    %c80 = arith.constant 80 : index
    %c0_35 = arith.constant 0 : index
    %103 = vector.load %arg2[%c80, %c0_35] : memref<376x128xf32, #tpu.memory_space<vmem>>, vector<32x32xf32>
    %cst_36 = arith.constant dense<0.000000e+00> : vector<16x32xf32>
    %104 = tpu.matmul %102, %103, %cst_36 {dimension_numbers = #tpu.dot_dimension_numbers<[1], [0], [0], [1], [0, 0, 1, 1], [], []>} : vector<16x32xf32>, vector<32x32xf32>, vector<16x32xf32> -> vector<16x32xf32>
    %c112 = arith.constant 112 : index
    %c0_37 = arith.constant 0 : index
    %105 = vector.load %arg2[%c112, %c0_37] : memref<376x128xf32, #tpu.memory_space<vmem>>, vector<1x32xf32>
    %106 = vector.broadcast %105 : vector<1x32xf32> to vector<16x32xf32>
    %107 = arith.addf %104, %106 : vector<16x32xf32>
    %108 = arith.addf %0, %107 : vector<16x32xf32>
    %109 = vector.extract_strided_slice %3 {offsets = [0, 0], sizes = [1, 32], strides = [1, 1]} : vector<3x32xf32> to vector<1x32xf32>
    %110 = vector.extract_strided_slice %4 {offsets = [0, 0], sizes = [1, 32], strides = [1, 1]} : vector<3x32xf32> to vector<1x32xf32>
    %cst_38 = arith.constant dense<0.000000e+00> : vector<16xf32>
    %111 = vector.multi_reduction <add>, %108, %cst_38 [1] : vector<16x32xf32> to vector<16xf32>
    %112 = vector.shape_cast %111 : vector<16xf32> to vector<16x1xf32>
    %cst_39 = arith.constant 3.200000e+01 : f32
    %113 = vector.broadcast %cst_39 : f32 to vector<16x1xf32>
    %114 = arith.divf %112, %113 : vector<16x1xf32>
    %115 = vector.broadcast %114 : vector<16x1xf32> to vector<16x32xf32>
    %116 = arith.subf %108, %115 : vector<16x32xf32>
    %117 = arith.mulf %116, %116 : vector<16x32xf32>
    %cst_40 = arith.constant dense<0.000000e+00> : vector<16xf32>
    %118 = vector.multi_reduction <add>, %117, %cst_40 [1] : vector<16x32xf32> to vector<16xf32>
    %119 = vector.shape_cast %118 : vector<16xf32> to vector<16x1xf32>
    %cst_41 = arith.constant 3.200000e+01 : f32
    %120 = vector.broadcast %cst_41 : f32 to vector<16x1xf32>
    %121 = arith.divf %119, %120 : vector<16x1xf32>
    %cst_42 = arith.constant 9.99999974E-6 : f32
    %122 = vector.broadcast %cst_42 : f32 to vector<16x1xf32>
    %123 = arith.addf %121, %122 : vector<16x1xf32>
    %124 = math.rsqrt %123 : vector<16x1xf32>
    %125 = vector.broadcast %124 : vector<16x1xf32> to vector<16x32xf32>
    %126 = arith.mulf %116, %125 : vector<16x32xf32>
    %127 = vector.broadcast %109 : vector<1x32xf32> to vector<16x32xf32>
    %128 = arith.mulf %126, %127 : vector<16x32xf32>
    %129 = vector.broadcast %110 : vector<1x32xf32> to vector<16x32xf32>
    %130 = arith.addf %128, %129 : vector<16x32xf32>
    %c120 = arith.constant 120 : index
    %c0_43 = arith.constant 0 : index
    %131 = vector.load %arg2[%c120, %c0_43] : memref<376x128xf32, #tpu.memory_space<vmem>>, vector<32x32xf32>
    %cst_44 = arith.constant dense<0.000000e+00> : vector<16x32xf32>
    %132 = tpu.matmul %130, %131, %cst_44 {dimension_numbers = #tpu.dot_dimension_numbers<[1], [0], [0], [1], [0, 0, 1, 1], [], []>} : vector<16x32xf32>, vector<32x32xf32>, vector<16x32xf32> -> vector<16x32xf32>
    %c152 = arith.constant 152 : index
    %c0_45 = arith.constant 0 : index
    %133 = vector.load %arg2[%c152, %c0_45] : memref<376x128xf32, #tpu.memory_space<vmem>>, vector<1x32xf32>
    %134 = vector.broadcast %133 : vector<1x32xf32> to vector<16x32xf32>
    %135 = arith.addf %132, %134 : vector<16x32xf32>
    %136 = vector.extract_strided_slice %135 {offsets = [0, 0], sizes = [8, 32], strides = [1, 1]} : vector<16x32xf32> to vector<8x32xf32>
    %137 = vector.extract_strided_slice %9 {offsets = [0, 0], sizes = [8, 128], strides = [1, 1]} : vector<16x128xf32> to vector<8x128xf32>
    %138 = vector.extract_strided_slice %137 {offsets = [0, 0], sizes = [8, 32], strides = [1, 1]} : vector<8x128xf32> to vector<8x32xf32>
    %139 = vector.extract_strided_slice %137 {offsets = [0, 64], sizes = [8, 32], strides = [1, 1]} : vector<8x128xf32> to vector<8x32xf32>
    %cst_46 = arith.constant dense<0.000000e+00> : vector<8x8xf32>
    %140 = tpu.matmul %136, %138, %cst_46 {dimension_numbers = #tpu.dot_dimension_numbers<[1], [1], [0], [0], [0, 0, 1, 0], [], []>} : vector<8x32xf32>, vector<8x32xf32>, vector<8x8xf32> -> vector<8x8xf32>
    %cst_47 = arith.constant dense<0xFF800000> : vector<8xf32>
    %141 = vector.multi_reduction <maximumf>, %140, %cst_47 [1] : vector<8x8xf32> to vector<8xf32>
    %142 = vector.shape_cast %141 : vector<8xf32> to vector<8x1xf32>
    %143 = vector.broadcast %142 : vector<8x1xf32> to vector<8x8xf32>
    %144 = arith.subf %140, %143 : vector<8x8xf32>
    %145 = math.exp %144 : vector<8x8xf32>
    %cst_48 = arith.constant dense<0.000000e+00> : vector<8xf32>
    %146 = vector.multi_reduction <add>, %145, %cst_48 [1] : vector<8x8xf32> to vector<8xf32>
    %147 = vector.shape_cast %146 : vector<8xf32> to vector<8x1xf32>
    %148 = tpu.reciprocal %147 {approx = true} : vector<8x1xf32> -> vector<8x1xf32>
    %149 = arith.mulf %147, %148 : vector<8x1xf32>
    %cst_49 = arith.constant 2.000000e+00 : f32
    %150 = vector.broadcast %cst_49 : f32 to vector<8x1xf32>
    %151 = arith.subf %150, %149 : vector<8x1xf32>
    %152 = arith.mulf %148, %151 : vector<8x1xf32>
    %cst_50 = arith.constant dense<0.000000e+00> : vector<8x32xf32>
    %153 = tpu.matmul %145, %139, %cst_50 {dimension_numbers = #tpu.dot_dimension_numbers<[1], [0], [0], [1], [0, 0, 1, 1], [], []>} : vector<8x8xf32>, vector<8x32xf32>, vector<8x32xf32> -> vector<8x32xf32>
    %154 = vector.broadcast %152 : vector<8x1xf32> to vector<8x32xf32>
    %155 = arith.mulf %153, %154 : vector<8x32xf32>
    %156 = vector.extract_strided_slice %137 {offsets = [0, 32], sizes = [8, 32], strides = [1, 1]} : vector<8x128xf32> to vector<8x32xf32>
    %157 = vector.extract_strided_slice %137 {offsets = [0, 96], sizes = [8, 32], strides = [1, 1]} : vector<8x128xf32> to vector<8x32xf32>
    %cst_51 = arith.constant dense<0.000000e+00> : vector<8x8xf32>
    %158 = tpu.matmul %136, %156, %cst_51 {dimension_numbers = #tpu.dot_dimension_numbers<[1], [1], [0], [0], [0, 0, 1, 0], [], []>} : vector<8x32xf32>, vector<8x32xf32>, vector<8x8xf32> -> vector<8x8xf32>
    %cst_52 = arith.constant dense<0xFF800000> : vector<8xf32>
    %159 = vector.multi_reduction <maximumf>, %158, %cst_52 [1] : vector<8x8xf32> to vector<8xf32>
    %160 = vector.shape_cast %159 : vector<8xf32> to vector<8x1xf32>
    %161 = vector.broadcast %160 : vector<8x1xf32> to vector<8x8xf32>
    %162 = arith.subf %158, %161 : vector<8x8xf32>
    %163 = math.exp %162 : vector<8x8xf32>
    %cst_53 = arith.constant dense<0.000000e+00> : vector<8xf32>
    %164 = vector.multi_reduction <add>, %163, %cst_53 [1] : vector<8x8xf32> to vector<8xf32>
    %165 = vector.shape_cast %164 : vector<8xf32> to vector<8x1xf32>
    %166 = tpu.reciprocal %165 {approx = true} : vector<8x1xf32> -> vector<8x1xf32>
    %167 = arith.mulf %165, %166 : vector<8x1xf32>
    %cst_54 = arith.constant 2.000000e+00 : f32
    %168 = vector.broadcast %cst_54 : f32 to vector<8x1xf32>
    %169 = arith.subf %168, %167 : vector<8x1xf32>
    %170 = arith.mulf %166, %169 : vector<8x1xf32>
    %cst_55 = arith.constant dense<0.000000e+00> : vector<8x32xf32>
    %171 = tpu.matmul %163, %157, %cst_55 {dimension_numbers = #tpu.dot_dimension_numbers<[1], [0], [0], [1], [0, 0, 1, 1], [], []>} : vector<8x8xf32>, vector<8x32xf32>, vector<8x32xf32> -> vector<8x32xf32>
    %172 = vector.broadcast %170 : vector<8x1xf32> to vector<8x32xf32>
    %173 = arith.mulf %171, %172 : vector<8x32xf32>
    %174 = arith.addf %155, %173 : vector<8x32xf32>
    %175 = vector.extract_strided_slice %135 {offsets = [8, 0], sizes = [8, 32], strides = [1, 1]} : vector<16x32xf32> to vector<8x32xf32>
    %176 = vector.extract_strided_slice %9 {offsets = [8, 0], sizes = [8, 128], strides = [1, 1]} : vector<16x128xf32> to vector<8x128xf32>
    %177 = vector.extract_strided_slice %176 {offsets = [0, 0], sizes = [8, 32], strides = [1, 1]} : vector<8x128xf32> to vector<8x32xf32>
    %178 = vector.extract_strided_slice %176 {offsets = [0, 64], sizes = [8, 32], strides = [1, 1]} : vector<8x128xf32> to vector<8x32xf32>
    %cst_56 = arith.constant dense<0.000000e+00> : vector<8x8xf32>
    %179 = tpu.matmul %175, %177, %cst_56 {dimension_numbers = #tpu.dot_dimension_numbers<[1], [1], [0], [0], [0, 0, 1, 0], [], []>} : vector<8x32xf32>, vector<8x32xf32>, vector<8x8xf32> -> vector<8x8xf32>
    %cst_57 = arith.constant dense<0xFF800000> : vector<8xf32>
    %180 = vector.multi_reduction <maximumf>, %179, %cst_57 [1] : vector<8x8xf32> to vector<8xf32>
    %181 = vector.shape_cast %180 : vector<8xf32> to vector<8x1xf32>
    %182 = vector.broadcast %181 : vector<8x1xf32> to vector<8x8xf32>
    %183 = arith.subf %179, %182 : vector<8x8xf32>
    %184 = math.exp %183 : vector<8x8xf32>
    %cst_58 = arith.constant dense<0.000000e+00> : vector<8xf32>
    %185 = vector.multi_reduction <add>, %184, %cst_58 [1] : vector<8x8xf32> to vector<8xf32>
    %186 = vector.shape_cast %185 : vector<8xf32> to vector<8x1xf32>
    %187 = tpu.reciprocal %186 {approx = true} : vector<8x1xf32> -> vector<8x1xf32>
    %188 = arith.mulf %186, %187 : vector<8x1xf32>
    %cst_59 = arith.constant 2.000000e+00 : f32
    %189 = vector.broadcast %cst_59 : f32 to vector<8x1xf32>
    %190 = arith.subf %189, %188 : vector<8x1xf32>
    %191 = arith.mulf %187, %190 : vector<8x1xf32>
    %cst_60 = arith.constant dense<0.000000e+00> : vector<8x32xf32>
    %192 = tpu.matmul %184, %178, %cst_60 {dimension_numbers = #tpu.dot_dimension_numbers<[1], [0], [0], [1], [0, 0, 1, 1], [], []>} : vector<8x8xf32>, vector<8x32xf32>, vector<8x32xf32> -> vector<8x32xf32>
    %193 = vector.broadcast %191 : vector<8x1xf32> to vector<8x32xf32>
    %194 = arith.mulf %192, %193 : vector<8x32xf32>
    %195 = vector.extract_strided_slice %176 {offsets = [0, 32], sizes = [8, 32], strides = [1, 1]} : vector<8x128xf32> to vector<8x32xf32>
    %196 = vector.extract_strided_slice %176 {offsets = [0, 96], sizes = [8, 32], strides = [1, 1]} : vector<8x128xf32> to vector<8x32xf32>
    %cst_61 = arith.constant dense<0.000000e+00> : vector<8x8xf32>
    %197 = tpu.matmul %175, %195, %cst_61 {dimension_numbers = #tpu.dot_dimension_numbers<[1], [1], [0], [0], [0, 0, 1, 0], [], []>} : vector<8x32xf32>, vector<8x32xf32>, vector<8x8xf32> -> vector<8x8xf32>
    %cst_62 = arith.constant dense<0xFF800000> : vector<8xf32>
    %198 = vector.multi_reduction <maximumf>, %197, %cst_62 [1] : vector<8x8xf32> to vector<8xf32>
    %199 = vector.shape_cast %198 : vector<8xf32> to vector<8x1xf32>
    %200 = vector.broadcast %199 : vector<8x1xf32> to vector<8x8xf32>
    %201 = arith.subf %197, %200 : vector<8x8xf32>
    %202 = math.exp %201 : vector<8x8xf32>
    %cst_63 = arith.constant dense<0.000000e+00> : vector<8xf32>
    %203 = vector.multi_reduction <add>, %202, %cst_63 [1] : vector<8x8xf32> to vector<8xf32>
    %204 = vector.shape_cast %203 : vector<8xf32> to vector<8x1xf32>
    %205 = tpu.reciprocal %204 {approx = true} : vector<8x1xf32> -> vector<8x1xf32>
    %206 = arith.mulf %204, %205 : vector<8x1xf32>
    %cst_64 = arith.constant 2.000000e+00 : f32
    %207 = vector.broadcast %cst_64 : f32 to vector<8x1xf32>
    %208 = arith.subf %207, %206 : vector<8x1xf32>
    %209 = arith.mulf %205, %208 : vector<8x1xf32>
    %cst_65 = arith.constant dense<0.000000e+00> : vector<8x32xf32>
    %210 = tpu.matmul %202, %196, %cst_65 {dimension_numbers = #tpu.dot_dimension_numbers<[1], [0], [0], [1], [0, 0, 1, 1], [], []>} : vector<8x8xf32>, vector<8x32xf32>, vector<8x32xf32> -> vector<8x32xf32>
    %211 = vector.broadcast %209 : vector<8x1xf32> to vector<8x32xf32>
    %212 = arith.mulf %210, %211 : vector<8x32xf32>
    %213 = arith.addf %194, %212 : vector<8x32xf32>
    %214 = tpu.concatenate %174, %213 in 0 : vector<8x32xf32>, vector<8x32xf32> -> vector<16x32xf32>
    %c200 = arith.constant 200 : index
    %c0_66 = arith.constant 0 : index
    %215 = vector.load %arg2[%c200, %c0_66] : memref<376x128xf32, #tpu.memory_space<vmem>>, vector<32x32xf32>
    %cst_67 = arith.constant dense<0.000000e+00> : vector<16x32xf32>
    %216 = tpu.matmul %214, %215, %cst_67 {dimension_numbers = #tpu.dot_dimension_numbers<[1], [0], [0], [1], [0, 0, 1, 1], [], []>} : vector<16x32xf32>, vector<32x32xf32>, vector<16x32xf32> -> vector<16x32xf32>
    %c232 = arith.constant 232 : index
    %c0_68 = arith.constant 0 : index
    %217 = vector.load %arg2[%c232, %c0_68] : memref<376x128xf32, #tpu.memory_space<vmem>>, vector<1x32xf32>
    %218 = vector.broadcast %217 : vector<1x32xf32> to vector<16x32xf32>
    %219 = arith.addf %216, %218 : vector<16x32xf32>
    %220 = arith.addf %130, %219 : vector<16x32xf32>
    %221 = vector.extract_strided_slice %3 {offsets = [1, 0], sizes = [1, 32], strides = [1, 1]} : vector<3x32xf32> to vector<1x32xf32>
    %222 = vector.extract_strided_slice %4 {offsets = [1, 0], sizes = [1, 32], strides = [1, 1]} : vector<3x32xf32> to vector<1x32xf32>
    %cst_69 = arith.constant dense<0.000000e+00> : vector<16xf32>
    %223 = vector.multi_reduction <add>, %220, %cst_69 [1] : vector<16x32xf32> to vector<16xf32>
    %224 = vector.shape_cast %223 : vector<16xf32> to vector<16x1xf32>
    %cst_70 = arith.constant 3.200000e+01 : f32
    %225 = vector.broadcast %cst_70 : f32 to vector<16x1xf32>
    %226 = arith.divf %224, %225 : vector<16x1xf32>
    %227 = vector.broadcast %226 : vector<16x1xf32> to vector<16x32xf32>
    %228 = arith.subf %220, %227 : vector<16x32xf32>
    %229 = arith.mulf %228, %228 : vector<16x32xf32>
    %cst_71 = arith.constant dense<0.000000e+00> : vector<16xf32>
    %230 = vector.multi_reduction <add>, %229, %cst_71 [1] : vector<16x32xf32> to vector<16xf32>
    %231 = vector.shape_cast %230 : vector<16xf32> to vector<16x1xf32>
    %cst_72 = arith.constant 3.200000e+01 : f32
    %232 = vector.broadcast %cst_72 : f32 to vector<16x1xf32>
    %233 = arith.divf %231, %232 : vector<16x1xf32>
    %cst_73 = arith.constant 9.99999974E-6 : f32
    %234 = vector.broadcast %cst_73 : f32 to vector<16x1xf32>
    %235 = arith.addf %233, %234 : vector<16x1xf32>
    %236 = math.rsqrt %235 : vector<16x1xf32>
    %237 = vector.broadcast %236 : vector<16x1xf32> to vector<16x32xf32>
    %238 = arith.mulf %228, %237 : vector<16x32xf32>
    %239 = vector.broadcast %221 : vector<1x32xf32> to vector<16x32xf32>
    %240 = arith.mulf %238, %239 : vector<16x32xf32>
    %241 = vector.broadcast %222 : vector<1x32xf32> to vector<16x32xf32>
    %242 = arith.addf %240, %241 : vector<16x32xf32>
    %c240 = arith.constant 240 : index
    %c0_74 = arith.constant 0 : index
    %243 = vector.load %arg2[%c240, %c0_74] : memref<376x128xf32, #tpu.memory_space<vmem>>, vector<32x64xf32>
    %cst_75 = arith.constant dense<0.000000e+00> : vector<16x64xf32>
    %244 = tpu.matmul %242, %243, %cst_75 {dimension_numbers = #tpu.dot_dimension_numbers<[1], [0], [0], [1], [0, 0, 1, 1], [], []>} : vector<16x32xf32>, vector<32x64xf32>, vector<16x64xf32> -> vector<16x64xf32>
    %c272 = arith.constant 272 : index
    %c0_76 = arith.constant 0 : index
    %245 = vector.load %arg2[%c272, %c0_76] : memref<376x128xf32, #tpu.memory_space<vmem>>, vector<1x64xf32>
    %246 = vector.broadcast %245 : vector<1x64xf32> to vector<16x64xf32>
    %247 = arith.addf %244, %246 : vector<16x64xf32>
    %cst_77 = arith.constant 0.000000e+00 : f32
    %248 = vector.broadcast %cst_77 : f32 to vector<16x64xf32>
    %249 = arith.maximumf %247, %248 : vector<16x64xf32>
    %c280 = arith.constant 280 : index
    %c0_78 = arith.constant 0 : index
    %250 = vector.load %arg2[%c280, %c0_78] : memref<376x128xf32, #tpu.memory_space<vmem>>, vector<64x32xf32>
    %cst_79 = arith.constant dense<0.000000e+00> : vector<16x32xf32>
    %251 = tpu.matmul %249, %250, %cst_79 {dimension_numbers = #tpu.dot_dimension_numbers<[1], [0], [0], [1], [0, 0, 1, 1], [], []>} : vector<16x64xf32>, vector<64x32xf32>, vector<16x32xf32> -> vector<16x32xf32>
    %c344 = arith.constant 344 : index
    %c0_80 = arith.constant 0 : index
    %252 = vector.load %arg2[%c344, %c0_80] : memref<376x128xf32, #tpu.memory_space<vmem>>, vector<1x32xf32>
    %253 = vector.broadcast %252 : vector<1x32xf32> to vector<16x32xf32>
    %254 = arith.addf %251, %253 : vector<16x32xf32>
    %255 = arith.addf %242, %254 : vector<16x32xf32>
    %256 = vector.extract_strided_slice %3 {offsets = [2, 0], sizes = [1, 32], strides = [1, 1]} : vector<3x32xf32> to vector<1x32xf32>
    %257 = vector.extract_strided_slice %4 {offsets = [2, 0], sizes = [1, 32], strides = [1, 1]} : vector<3x32xf32> to vector<1x32xf32>
    %cst_81 = arith.constant dense<0.000000e+00> : vector<16xf32>
    %258 = vector.multi_reduction <add>, %255, %cst_81 [1] : vector<16x32xf32> to vector<16xf32>
    %259 = vector.shape_cast %258 : vector<16xf32> to vector<16x1xf32>
    %cst_82 = arith.constant 3.200000e+01 : f32
    %260 = vector.broadcast %cst_82 : f32 to vector<16x1xf32>
    %261 = arith.divf %259, %260 : vector<16x1xf32>
    %262 = vector.broadcast %261 : vector<16x1xf32> to vector<16x32xf32>
    %263 = arith.subf %255, %262 : vector<16x32xf32>
    %264 = arith.mulf %263, %263 : vector<16x32xf32>
    %cst_83 = arith.constant dense<0.000000e+00> : vector<16xf32>
    %265 = vector.multi_reduction <add>, %264, %cst_83 [1] : vector<16x32xf32> to vector<16xf32>
    %266 = vector.shape_cast %265 : vector<16xf32> to vector<16x1xf32>
    %cst_84 = arith.constant 3.200000e+01 : f32
    %267 = vector.broadcast %cst_84 : f32 to vector<16x1xf32>
    %268 = arith.divf %266, %267 : vector<16x1xf32>
    %cst_85 = arith.constant 9.99999974E-6 : f32
    %269 = vector.broadcast %cst_85 : f32 to vector<16x1xf32>
    %270 = arith.addf %268, %269 : vector<16x1xf32>
    %271 = math.rsqrt %270 : vector<16x1xf32>
    %272 = vector.broadcast %271 : vector<16x1xf32> to vector<16x32xf32>
    %273 = arith.mulf %263, %272 : vector<16x32xf32>
    %274 = vector.broadcast %256 : vector<1x32xf32> to vector<16x32xf32>
    %275 = arith.mulf %273, %274 : vector<16x32xf32>
    %276 = vector.broadcast %257 : vector<1x32xf32> to vector<16x32xf32>
    %277 = arith.addf %275, %276 : vector<16x32xf32>
    %c0_86 = arith.constant 0 : index
    %c0_87 = arith.constant 0 : index
    %278 = vector.load %arg3[%c0_86, %c0_87] : memref<16x32xf32, #tpu.memory_space<vmem>>, vector<16x32xf32>
    tpu.vector_store %arg3[%c0_86, %c0_87], %277 {strides = array<i32>} : memref<16x32xf32, #tpu.memory_space<vmem>>, vector<16x32xf32>,
    return
  }
}

</mosaic_0001>

<bundles_post_ra>
// kernel: tpu_custom_call.1
= control target key start
LH: loop header
LB: loop body
LE: loop exit
PB: predicated region body
PF: predicated region fallthrough
CT: control target
= control target key end

     0   :  { %8 = vsyncpa [#allocation3], 0  ;;  %s1464_s0 = inlined_call_operand.hbm [shape: f32[16,32], index: 0, kind: input, shape index: {}]   ;;  %s1465_s1 = inlined_call_operand.hbm [shape: f32[16,32], index: 1, kind: input, shape index: {}]   ;;  %s1466_s2 = inlined_call_operand.hbm [shape: f32[376,128], index: 2, kind: input, shape index: {}]   ;;  %s1467_s3 = inlined_call_operand.hbm [shape: f32[16,32], index: 3, kind: output, shape index: {}]  }
   0x1   :  { %9 = vsyncpa [#allocation6], 0 }
   0x2   :  { %10 = vsyncpa [#allocation4], 0  ;;  %s28_s14 = sshll.u32 %s1465_s1, 4  ;;  %s1267_s15 = smov [#allocation5]   ;;  %s29_s14 = int_to_ptr.hbm [resolvable:$true] %s28_s14 }
   0x3   :  { %s30_s16 = sshll.u32 %s1267_s15, 4  ;;  %s15_s19 = sshll.u32 %s1464_s0, 4  ;;  %s31_s16 = int_to_ptr.vmem [resolvable:$true] %s30_s16  ;;  %s16_s19 = int_to_ptr.hbm [resolvable:$true] %s15_s19 }
   0x4   :  { %s1268_s20 = smov 128   ;;  %s1269_s21 = smov 8  }
   0x5   :  { %36 = dma.hbm_to_vmem [thread:$0]  %s29_s14, 256, %s31_s16, [#allocation6], %s1268_s20, %s1268_s20, %s1269_s21  }
   0x6   :  { %s1270_s22 = smov [#allocation2]   ;;  %s41_s1 = sshll.u32 %s1466_s2, 4  ;;  %s42_s1 = int_to_ptr.hbm [resolvable:$true] %s41_s1 }
   0x7   :  { %s17_s23 = sshll.u32 %s1270_s22, 4  ;;  %s1271_s0 = smov [#allocation7]   ;;  %s18_s23 = int_to_ptr.vmem [resolvable:$true] %s17_s23 }
   0x8   :  { %23 = dma.hbm_to_vmem [thread:$0]  %s16_s19, 256, %s18_s23, [#allocation3], %s1268_s20, %s1268_s20, %s1269_s21  }
   0x9   :  { %s43_s26 = sshll.u32 %s1271_s0, 4  ;;  %s44_s26 = int_to_ptr.vmem [resolvable:$true] %s43_s26 }
   0xa   :  { %49 = dma.hbm_to_vmem [thread:$0]  %s42_s1, 6016, %s44_s26, [#allocation6], %s1268_s20, %s1268_s20, %s1269_s21  }
   0xb   :  { %1261 = dma.done.wait [#allocation3], 256  }
   0xc   :  { %1262 = vsyncadd [#allocation3], 4294967040 }
   0xd   :  { %1263 = dma.done.wait [#allocation6], 6272  }
   0xe   :  { %1264 = vsyncadd [#allocation6], 4294961024  ;;  %v143_v0 = vld [vmem:[#allocation7 + $0x40] sm:$0xff]  ;;  %v142_v1 = vld [vmem:[#allocation7 + $0x38] sm:$0xff]  ;;  %vm75_vm0 = vcmask 261120   ;;  %s1272_s2 = smov 96  }
   0xf   :  { %158 = vmatpush.msra.mxu2 %v143_v0  ;;  %v108_v2 = vld [vmem:[#allocation7 + $0x18] sm:$0xff]  ;;  %v141_v3 = vld [vmem:[#allocation7 + $0x30] sm:$0xff]  ;;  %v106_v5 = vld [vmem:[#allocation7 + $0x8] sm:$0xff]  ;;  %s1273_s27 = smov 32   ;;  %s1274_s28 = smov 64   ;;  %vm195_vm1 = vcmask 64512  }
  0x10   :  { %129 = vmatpush.msra.mxu1 %v108_v2  ;;  %v107_v4 = vld [vmem:[#allocation7 + $0x10] sm:$0xff]  ;;  %v72_v6 = vld [vmem:[#allocation7 + $0xb8] sm:$0xff]  ;;  %v140_v8 = vld [vmem:[#allocation7 + $0x28] sm:$0xff]  ;;  %vm957_vm15 = vcmask 523264   ;;  %s1276_s29 = smov [#allocation8]   ;;  %s1047_s6 = sshll.u32 %s1467_s3, 4  ;;  %s1048_s6 = int_to_ptr.hbm [resolvable:$true] %s1047_s6 }
  0x11   :  { %159 = vmatpush.msra.mxu2 %v142_v1  ;;  %v71_v7 = vld [vmem:[#allocation7 + $0xb0] sm:$0xff]  ;;  %v1315_v9 = vld [vmem:[#allocation2] sm:$0xff]  ;;  %94 = vmatpush.msra.mxu0 %v72_v6  ;;  %v70_v11 = vld [vmem:[#allocation7 + $0xa8] sm:$0xff]  ;;  %s1045_s30 = sshll.u32 %s1276_s29, 4  ;;  %s1046_s30 = int_to_ptr.vmem [resolvable:$true] %s1045_s30 }
  0x12   :  { %130 = vmatpush.msra.mxu1 %v107_v4  ;;  %v105_v10 = vld [vmem:[#allocation7] sm:$0xff]  ;;  %v64_v13 = vld [vmem:[#allocation5] sm:$0xff]  ;;  %v1322_v14 = vld [vmem:[#allocation2 + $0x8] sm:$0xff] }
  0x13   :  { %160 = vmatpush.msra.mxu2 %v141_v3  ;;  %95 = vmatpush.msra.mxu0 %v71_v7  ;;  %v69_v12 = vld [vmem:[#allocation7 + $0xa0] sm:$0xff]  ;;  %v65_v15 = vld [vmem:[#allocation5 + $0x8] sm:$0xff]  ;;  %v1111_v16 = vld [vmem:[#allocation7 + $0x48] ss:$0 sm:$0xff] }
  0x14   :  { %131 = vmatpush.msra.mxu1 %v106_v5  ;;  %v1112_v17 = vld [vmem:[#allocation7 + $0x20] ss:$0 sm:$0xff]  ;;  %v435_v25 = vld [vmem:[#allocation7 + $0x68] sm:$0xff]  ;;  %v433_v29 = vld [vmem:[#allocation7 + $0x58] sm:$0xff] }
  0x15   :  { %161 = vmatpush.msra.mxu2 %v140_v8  ;;  %96 = vmatpush.msra.mxu0 %v70_v11  ;;  %v434_v27 = vld [vmem:[#allocation7 + $0x60] sm:$0xff]  ;;  %v432_v33 = vld [vmem:[#allocation7 + $0x50] sm:$0xff] }
  0x16   :  { %1065 = vmatmul.msk.f32.vlgmr.msra.gmra.mxu2 %vm75_vm0, %v1315_v9  ;;  %132 = vmatpush.msra.mxu1 %v105_v10  ;;  %v1113_v28 = vld [vmem:[#allocation7 + $0xc0] ss:$0 sm:$0xff]  ;;  %v66_v36 = vld [vmem:[#allocation7 + $0x170] sm:$0xff] }
  0x17   :  { %1063 = vmatmul.msk.f32.vlgmr.msra.gmra.mxu1 %vm75_vm0, %v1315_v9  ;;  %97 = vmatpush.msra.mxu0 %v69_v12  ;;  %v529_v12 = vld [vmem:[#allocation7 + $0x90] sm:$0xff] }
  0x18   :  { %1061 = vmatmul.msk.f32.vlgmr.msra.gmra.mxu0 %vm75_vm0, %v64_v13  ;;  %v528_v13 = vld [vmem:[#allocation7 + $0x88] sm:$0xff] }
  0x1e   :  { %1066 = vmatmul.msk.f32.gmra.mxu2 %vm75_vm0, %v1322_v14 }
  0x1f   :  { %1064 = vmatmul.msk.f32.gmra.mxu1 %vm75_vm0, %v1322_v14 }
  0x20   :  { %1062 = vmatmul.msk.f32.gmra.mxu0 %vm75_vm0, %v65_v15  ;;  %v527_v15 = vld [vmem:[#allocation7 + $0x80] sm:$0xff] }
  0x94   :  { %v134_v18 = vpop.f32.mrf.mxu1 }
  0x95   :  { %v135_v21 = vadd.f32 %v1112_v17, %v134_v18  ;;  %v99_v24 = vpop.f32.mrf.mxu0 }
  0x96   :  { %v1353_v51 = vadd.f32 %v1113_v28, %v99_v24 }
  0x99   :  { %v163_v19 = vpop.f32.mrf.mxu2 }
  0x9a   :  { %v164_v20 = vadd.f32 %v1111_v16, %v163_v19 }
  0x9c   :  { %236 = vrot.lane.b32.xlu1 %v164_v20, %s1272_s2  ;;  %1067 = vmatpush.xpose.msk.msrb.mxu0 %vm75_vm0, %v164_v20  ;;  %v137_v31 = vpop.f32.mrf.mxu1 }
  0x9d   :  { %v102_v26 = vpop.f32.mrf.mxu0  ;;  %v138_v32 = vadd.f32 %v1112_v17, %v137_v31 }
  0x9e   :  { %v1341_v30 = vadd.f32 %v1113_v28, %v102_v26 }
  0x9f   :  { %1068 = vmatmul.msk.f32.vlgmr.msrb.gmra.mxu0 %vm75_vm0, %v135_v21 }
  0xa1   :  { %v166_v22 = vpop.f32.mrf.mxu2 }
  0xa2   :  { %v1332_v23 = vadd.f32 %v1111_v16, %v166_v22  ;;  %v526_v16 = vld [vmem:[#allocation7 + $0x78] sm:$0xff] }
  0xa4   :  { %367 = vrot.lane.b32.xlu1 %v1332_v23, %s1272_s2  ;;  %1073 = vmatpush.xpose.msk.msrb.mxu1 %vm75_vm0, %v1332_v23 }
  0xa7   :  { %1074 = vmatmul.msk.f32.vlgmr.msrb.gmra.mxu1 %vm75_vm0, %v138_v32 }
  0xa8   :  { %456 = vmatpush.msra.mxu1 %v435_v25 }
  0xaa   :  { %457 = vmatpush.msra.mxu1 %v434_v27 }
  0xac   :  { %273 = vrot.lane.b32.xlu1 %v164_v20, %s1273_s27  ;;  %458 = vmatpush.msra.mxu1 %v433_v29 }
  0xae   :  { %459 = vmatpush.msra.mxu1 %v432_v33 }
  0xb0   :  { %1089 = vmatpush.xpose.msk.msrb.mxu1 %vm75_vm0, %v1341_v30 }
  0xb4   :  { %340 = vrot.lane.b32.xlu1 %v1332_v23, %s1274_s28 }
 0x10e   :  { %v237_v34 = vpop.permute.xlu1 %236 }
 0x116   :  { %v368_v35 = vpop.permute.xlu1 %367 }
 0x11c   :  { %v192_v37 = vpop.f32.mrf.mxu0 }
 0x11d   :  { %v193_v38 = vadd.f32 %v192_v37, %v66_v36 }
 0x11e   :  { %v274_v39 = vpop.permute.xlu1 %273 }
 0x11f   :  { %294 = vmatpush.msra.mxu0 %v274_v39  ;;  %v196_v40 = vsel %vm195_vm1, %v193_v38, -inf }
 0x120   :  { %197 = vmax.xlane.f32.xlu0 %v196_v40 }
 0x124   :  { %v324_v44 = vpop.f32.mrf.mxu1 }
 0x125   :  { %v325_v45 = vadd.f32 %v324_v44, %v66_v36 }
 0x126   :  { %v341_v46 = vpop.permute.xlu1 %340 }
 0x127   :  { %361 = vmatpush.msrb.mxu2 %v341_v46  ;;  %v327_v47 = vsel %vm195_vm1, %v325_v45, -inf }
 0x128   :  { %328 = vmax.xlane.f32.xlu2 %v327_v47 }
 0x129   :  { %550 = vmatpush.msra.mxu2 %v529_v12 }
 0x12b   :  { %551 = vmatpush.msra.mxu2 %v528_v13 }
 0x12d   :  { %552 = vmatpush.msra.mxu2 %v527_v15 }
 0x12f   :  { %553 = vmatpush.msra.mxu2 %v526_v16 }
 0x134   :  { %209 = vrot.lane.b32.xlu0 %v164_v20, %s1274_s28 }
 0x193   :  { %v198_v41 = vpop.xlane.xlu0 %197 }
 0x194   :  { %v199_v42 = vsub.f32 %v193_v38, %v198_v41 }
 0x196   :  { %v200_v43 = vmul.f32 1.442695, %v199_v42 }
 0x198   :  { %1119 = vpow2.f32 %v200_v43 }
 0x19b   :  { %v329_v52 = vpop.xlane.xlu2 %328 }
 0x19c   :  { %v330_v53 = vsub.f32 %v325_v45, %v329_v52 }
 0x19e   :  { %v1120_v48 = vpop.eup %1119  ;;  %v331_v54 = vmul.f32 1.442695, %v330_v53 }
 0x19f   :  { %v202_v49 = vsel %vm195_vm1, %v1120_v48, 0.0 }
 0x1a0   :  { %203 = vadd.xlane.f32.xlu0 %v202_v49  ;;  %1121 = vpow2.f32 %v331_v54 }
 0x1a6   :  { %v210_v50 = vpop.permute.xlu0 %209  ;;  %v1122_v55 = vpop.eup %1121 }
 0x1a7   :  { %230 = vmatpush.msra.mxu3 %v210_v50  ;;  %1075 = vmatmul.msk.f32.vlgmr.msrb.gmra.mxu2 %vm195_vm1, %v1122_v55  ;;  %v333_v63 = vsel %vm195_vm1, %v1122_v55, 0.0  ;;  %v1114_v50 = vld [vmem:[#allocation7 + $0x70] ss:$0 sm:$0xff] }
 0x1a8   :  { %1069 = vmatmul.msk.f32.vlgmr.msra.gmra.mxu3 %vm195_vm1, %v1120_v48 }
 0x1a9   :  { %1070 = vmatpush.xpose.msk.msrb.mxu3 %vm75_vm0, %v237_v34 }
 0x1ad   :  { %1076 = vmatpush.xpose.msk.msra.mxu3 %vm75_vm0, %v368_v35 }
 0x1b0   :  { %1071 = vmatmul.msk.f32.vlgmr.msrb.gmra.mxu3 %vm75_vm0, %v135_v21 }
 0x1b1   :  { %1083 = vmatpush.xpose.msk.msrb.mxu3 %vm75_vm0, %v1353_v51 }
 0x1b8   :  { %1077 = vmatmul.msk.f32.vlgmr.msra.gmra.mxu3 %vm75_vm0, %v138_v32 }
 0x213   :  { %v204_v21 = vpop.xlane.xlu0 %203 }
 0x22a   :  { %v363_v45 = vpop.f32.mrf.mxu2 }
 0x22b   :  { %v1360_v56 = vpop.f32.mrf.mxu3 }
 0x233   :  { %v257_v57 = vpop.f32.mrf.mxu3 }
 0x234   :  { %v258_v58 = vadd.f32 %v257_v57, %v66_v36 }
 0x236   :  { %v260_v59 = vsel %vm195_vm1, %v258_v58, -inf }
 0x237   :  { %261 = vmax.xlane.f32.xlu2 %v260_v59 }
 0x23b   :  { %v388_v60 = vpop.f32.mrf.mxu3 }
 0x23c   :  { %v389_v61 = vadd.f32 %v388_v60, %v66_v36  ;;  %v1275_v60 = vmov 32.0  }
 0x23e   :  { %v391_v62 = vsel %vm195_vm1, %v389_v61, -inf }
 0x23f   :  { %392 = vmax.xlane.f32.xlu2 %v391_v62 }
 0x257   :  { %404 = vrot.lane.b32.xlu2 %v1332_v23, %s1273_s27 }
 0x280   :  { %334 = vadd.xlane.f32.xlu2 %v333_v63 }
 0x298   :  { %627 = vrot.lane.b32.xlu2 %v1353_v51, %s1272_s2 }
 0x2a0   :  { %600 = vrot.lane.b32.xlu2 %v1353_v51, %s1274_s28 }
 0x2a8   :  { %731 = vrot.lane.b32.xlu2 %v1341_v30, %s1274_s28 }
 0x2aa   :  { %v262_v0 = vpop.xlane.xlu2 %261 }
 0x2ab   :  { %v263_v1 = vsub.f32 %v258_v58, %v262_v0 }
 0x2ad   :  { %v264_v2 = vmul.f32 1.442695, %v263_v1 }
 0x2af   :  { %1123 = vpow2.f32 %v264_v2 }
 0x2b0   :  { %795 = vrot.lane.b32.xlu2 %v1341_v30, %s1273_s27 }
 0x2b2   :  { %v393_v3 = vpop.xlane.xlu2 %392 }
 0x2b3   :  { %v394_v4 = vsub.f32 %v389_v61, %v393_v3 }
 0x2b5   :  { %v1124_v5 = vpop.eup %1123  ;;  %v395_v6 = vmul.f32 1.442695, %v394_v4 }
 0x2b6   :  { %1072 = vmatmul.msk.f32.vlgmr.msra.gmra.mxu0 %vm195_vm1, %v1124_v5  ;;  %v266_v7 = vsel %vm195_vm1, %v1124_v5, 0.0 }
 0x2b7   :  { %1125 = vpow2.f32 %v395_v6  ;;  %267 = vadd.xlane.f32.xlu1 %v266_v7 }
 0x2b8   :  { %1127 = vrcp.f32 %v204_v21 }
 0x2ba   :  { %v405_v8 = vpop.permute.xlu2 %404 }
 0x2bb   :  { %425 = vmatpush.msrb.mxu0 %v405_v8 }
 0x2bd   :  { %v1126_v10 = vpop.eup %1125 }
 0x2be   :  { %1078 = vmatmul.msk.f32.vlgmr.msrb.gmra.mxu0 %vm195_vm1, %v1126_v10  ;;  %v397_v11 = vsel %vm195_vm1, %v1126_v10, 0.0  ;;  %v1128_v23 = vpop.eup %1127 }
 0x2bf   :  { %398 = vadd.xlane.f32.xlu0 %v397_v11  ;;  %v206_v24 = vmul.f32 %v1128_v23, %v204_v21 }
 0x2c1   :  { %v207_v27 = vsub.f32 2.0, %v206_v24 }
 0x2c3   :  { %v208_v34 = vmul.f32 %v1128_v23, %v207_v27  ;;  %v1397_v23 = vld [vmem:[#allocation7 + $0x160] sm:$0x7]  ;;  %v1399_v27 = vld [vmem:[#allocation7 + $0x168] sm:$0x7] }
 0x2c5   :  { %v235_v36 = vmul.f32 %v1360_v56, %v208_v34 }
 0x2f3   :  { %v335_v17 = vpop.xlane.xlu2 %334 }
 0x2f4   :  { %1129 = vrcp.f32 %v335_v17 }
 0x2fa   :  { %v1130_v25 = vpop.eup %1129 }
 0x2fb   :  { %v628_v18 = vpop.permute.xlu2 %627  ;;  %v337_v31 = vmul.f32 %v1130_v25, %v335_v17 }
 0x2fc   :  { %1086 = vmatpush.xpose.msk.msra.mxu3 %vm75_vm0, %v628_v18 }
 0x2fd   :  { %v338_v37 = vsub.f32 2.0, %v337_v31 }
 0x2ff   :  { %v339_v42 = vmul.f32 %v1130_v25, %v338_v37 }
 0x301   :  { %v366_v47 = vmul.f32 %v363_v45, %v339_v42 }
 0x303   :  { %v601_v19 = vpop.permute.xlu2 %600 }
 0x304   :  { %621 = vmatpush.msra.mxu0 %v601_v19 }
 0x30b   :  { %v732_v20 = vpop.permute.xlu2 %731 }
 0x30c   :  { %752 = vmatpush.msrb.mxu2 %v732_v20 }
 0x32a   :  { %v268_v22 = vpop.xlane.xlu1 %267 }
 0x32b   :  { %1131 = vrcp.f32 %v268_v22 }
 0x331   :  { %v1132_v26 = vpop.eup %1131 }
 0x332   :  { %v270_v28 = vmul.f32 %v1132_v26, %v268_v22  ;;  %v399_v29 = vpop.xlane.xlu0 %398 }
 0x333   :  { %1133 = vrcp.f32 %v399_v29  ;;  %v296_v33 = vpop.f32.mrf.mxu0 }
 0x334   :  { %v271_v32 = vsub.f32 2.0, %v270_v28  ;;  %1135 = vrcp.f32 %v1275_v60  ;;  %v520_v28 = vperm.slane %v1397_v23, 0 }
 0x336   :  { %v272_v35 = vmul.f32 %v1132_v26, %v271_v32 }
 0x338   :  { %v299_v38 = vmul.f32 %v296_v33, %v272_v35  ;;  %v523_v33 = vperm.slane %v1399_v27, 0 }
 0x339   :  { %v1134_v39 = vpop.eup %1133 }
 0x33a   :  { %v401_v40 = vmul.f32 %v1134_v39, %v399_v29  ;;  %v300_v41 = vadd.f32 %v299_v38, %v235_v36  ;;  %v1136_v61 = vpop.eup %1135 }
 0x33b   :  { %v427_v46 = vpop.f32.mrf.mxu0  ;;  %v476_v62 = vmul.f32 32.0, %v1136_v61  ;;  %vm480_vm2 = vweird.f32 %v1136_v61 }
 0x33c   :  { %v402_v43 = vsub.f32 2.0, %v401_v40  ;;  %1079 = vmatmul.msk.f32.vlgmr.msra.gmra.mxu1 %vm75_vm0, %v300_v41 }
 0x33d   :  { %v477_v63 = vsub.f32 1.0, %v476_v62 }
 0x33e   :  { %v403_v44 = vmul.f32 %v1134_v39, %v402_v43  ;;  %v1115_v43 = vld [vmem:[#allocation7 + $0x98] ss:$0 sm:$0xff] }
 0x33f   :  { %v478_v0 = vmul.f32 %v1136_v61, %v477_v63 }
 0x340   :  { %v430_v48 = vmul.f32 %v427_v46, %v403_v44 }
 0x341   :  { %v479_v1 = vadd.f32 %v1136_v61, %v478_v0 }
 0x342   :  { %v431_v49 = vadd.f32 %v430_v48, %v366_v47 }
 0x343   :  { %v1387_v2 = vsel %vm480_vm2, %v1136_v61, %v479_v1 }
 0x344   :  { %1080 = vmatmul.msk.f32.gmra.mxu1 %vm75_vm0, %v431_v49 }
 0x3b9   :  { %v461_v52 = vpop.f32.mrf.mxu1 }
 0x3ba   :  { %v462_v53 = vadd.f32 %v1114_v50, %v461_v52 }
 0x3bc   :  { %v467_v54 = vadd.f32 %v462_v53, %v1315_v9 }
 0x3be   :  { %v469_v55 = vsel %vm75_vm0, %v467_v54, 0.0 }
 0x3bf   :  { %470 = vadd.xlane.f32.xlu1 %v469_v55 }
 0x3c1   :  { %v464_v56 = vpop.f32.mrf.mxu1 }
 0x3c2   :  { %v465_v57 = vadd.f32 %v1114_v50, %v464_v56 }
 0x3c4   :  { %v468_v58 = vadd.f32 %v465_v57, %v1322_v14 }
 0x3c6   :  { %v472_v59 = vsel %vm75_vm0, %v468_v58, 0.0 }
 0x3c7   :  { %473 = vadd.xlane.f32.xlu0 %v472_v59 }
 0x432   :  { %v471_v9 = vpop.xlane.xlu1 %470 }
 0x433   :  { %v482_v3 = vmul.f32 %v1387_v2, %v471_v9 }
 0x435   :  { %v484_v4 = vsub.f32 %v467_v54, %v482_v3 }
 0x437   :  { %v486_v5 = vmul.f32 %v484_v4, %v484_v4 }
 0x439   :  { %v488_v14 = vsel %vm75_vm0, %v486_v5, 0.0 }
 0x43a   :  { %489 = vadd.xlane.f32.xlu1 %v488_v14  ;;  %v474_v6 = vpop.xlane.xlu0 %473 }
 0x43b   :  { %v483_v7 = vmul.f32 %v1387_v2, %v474_v6 }
 0x43d   :  { %v485_v8 = vsub.f32 %v468_v58, %v483_v7 }
 0x43f   :  { %v487_v10 = vmul.f32 %v485_v8, %v485_v8 }
 0x441   :  { %v491_v11 = vsel %vm75_vm0, %v487_v10, 0.0 }
 0x442   :  { %492 = vadd.xlane.f32.xlu0 %v491_v11 }
 0x453   :  { %758 = vrot.lane.b32.xlu1 %v1341_v30, %s1272_s2 }
 0x4ad   :  { %v490_v12 = vpop.xlane.xlu1 %489 }
 0x4ae   :  { %v494_v13 = vmul.f32 %v490_v12, %v1387_v2 }
 0x4b0   :  { %v496_v15 = vadd.f32 1e-05, %v494_v13 }
 0x4b2   :  { %1137 = vrsqrt.f32 %v496_v15  ;;  %vm504_vm4 = vweird.f32 %v496_v15 }
 0x4b5   :  { %v493_v16 = vpop.xlane.xlu0 %492 }
 0x4b6   :  { %v495_v17 = vmul.f32 %v493_v16, %v1387_v2  ;;  %v826_v16 = vld [vmem:[#allocation7 + $0xe0] sm:$0xff] }
 0x4b7   :  { %847 = vmatpush.msra.mxu1 %v826_v16  ;;  %v953_v16 = vld [vmem:[#allocation7 + $0x148] sm:$0xff] }
 0x4b8   :  { %v1138_v18 = vpop.eup %1137  ;;  %v497_v19 = vadd.f32 1e-05, %v495_v17  ;;  %v825_v17 = vld [vmem:[#allocation7 + $0xd8] sm:$0xff] }
 0x4b9   :  { %v499_v20 = vmul.f32 %v1138_v18, %v496_v15  ;;  %vm505_vm3 = vweird.f32 %v1138_v18  ;;  %v796_v15 = vpop.permute.xlu2 %795  ;;  %848 = vmatpush.msra.mxu1 %v825_v17  ;;  %v952_v17 = vld [vmem:[#allocation7 + $0x140] sm:$0xff] }
 0x4ba   :  { %1139 = vrsqrt.f32 %v497_v19  ;;  %vm506_vm5 = vmor %vm504_vm4, %vm505_vm3  ;;  %vm514_vm7 = vweird.f32 %v497_v19 }
 0x4bb   :  { %v500_v21 = vmul.f32 %v1138_v18, %v499_v20 }
 0x4bd   :  { %v501_v22 = vmul.f32 0.5, %v500_v21 }
 0x4bf   :  { %v502_v24 = vsub.f32 1.5, %v501_v22 }
 0x4c0   :  { %v1140_v25 = vpop.eup %1139 }
 0x4c1   :  { %v503_v30 = vmul.f32 %v1138_v18, %v502_v24  ;;  %v509_v26 = vmul.f32 %v1140_v25, %v497_v19  ;;  %vm515_vm6 = vweird.f32 %v1140_v25  ;;  %v823_v19 = vld [vmem:[#allocation7 + $0xc8] sm:$0xff] }
 0x4c2   :  { %vm516_vm8 = vmor %vm514_vm7, %vm515_vm6 }
 0x4c3   :  { %v507_v29 = vsel %vm506_vm5, %v1138_v18, %v503_v30  ;;  %v510_v31 = vmul.f32 %v1140_v25, %v509_v26  ;;  %v824_v18 = vld [vmem:[#allocation7 + $0xd0] sm:$0xff] }
 0x4c4   :  { %v518_v32 = vmul.f32 %v507_v29, %v484_v4  ;;  %849 = vmatpush.msra.mxu1 %v824_v18 }
 0x4c5   :  { %v511_v34 = vmul.f32 0.5, %v510_v31  ;;  %v759_v46 = vpop.permute.xlu1 %758 }
 0x4c6   :  { %v521_v35 = vmul.f32 %v520_v28, %v518_v32  ;;  %850 = vmatpush.msra.mxu1 %v823_v19 }
 0x4c7   :  { %v512_v36 = vsub.f32 1.5, %v511_v34 }
 0x4c8   :  { %v1403_v37 = vadd.f32 %v523_v33, %v521_v35 }
 0x4c9   :  { %v513_v38 = vmul.f32 %v1140_v25, %v512_v36 }
 0x4ca   :  { %1081 = vmatmul.msk.f32.vlgmr.msra.gmra.mxu2 %vm75_vm0, %v1403_v37 }
 0x4cb   :  { %v517_v39 = vsel %vm516_vm8, %v1140_v25, %v513_v38 }
 0x4cc   :  { %v519_v40 = vmul.f32 %v517_v39, %v485_v8 }
 0x4ce   :  { %v522_v41 = vmul.f32 %v520_v28, %v519_v40 }
 0x4d0   :  { %v1407_v42 = vadd.f32 %v523_v33, %v522_v41 }
 0x4d2   :  { %1082 = vmatmul.msk.f32.gmra.mxu2 %vm75_vm0, %v1407_v42 }
 0x54d   :  { %v555_v44 = vpop.f32.mrf.mxu2 }
 0x54e   :  { %v556_v45 = vadd.f32 %v1115_v43, %v555_v44 }
 0x550   :  { %1084 = vmatmul.msk.f32.vlgmr.msrb.gmra.mxu3 %vm75_vm0, %v556_v45 }
 0x551   :  { %1092 = vmatpush.xpose.msk.msrb.mxu3 %vm75_vm0, %v759_v46 }
 0x555   :  { %v558_v47 = vpop.f32.mrf.mxu2 }
 0x556   :  { %v559_v48 = vadd.f32 %v1115_v43, %v558_v47 }
 0x558   :  { %1087 = vmatmul.msk.f32.vlgmr.msra.gmra.mxu3 %vm75_vm0, %v556_v45  ;;  %1090 = vmatmul.msk.f32.vlgmr.msrb.gmra.mxu1 %vm75_vm0, %v559_v48 }
 0x560   :  { %1093 = vmatmul.msk.f32.vlgmr.msrb.gmra.mxu3 %vm75_vm0, %v559_v48 }
 0x5d3   :  { %v584_v49 = vpop.f32.mrf.mxu3 }
 0x5d4   :  { %v587_v50 = vsel %vm195_vm1, %v584_v49, -inf }
 0x5d5   :  { %588 = vmax.xlane.f32.xlu0 %v587_v50  ;;  %v715_v52 = vpop.f32.mrf.mxu1 }
 0x5d6   :  { %v718_v54 = vsel %vm195_vm1, %v715_v52, -inf }
 0x5db   :  { %v648_v53 = vpop.f32.mrf.mxu3 }
 0x5dc   :  { %v651_v57 = vsel %vm195_vm1, %v648_v53, -inf }
 0x5dd   :  { %719 = vmax.xlane.f32.xlu0 %v718_v54 }
 0x5e3   :  { %v779_v55 = vpop.f32.mrf.mxu3 }
 0x5e4   :  { %v782_v56 = vsel %vm195_vm1, %v779_v55, -inf }
 0x5e5   :  { %783 = vmax.xlane.f32.xlu1 %v782_v56  ;;  %652 = vmax.xlane.f32.xlu0 %v651_v57 }
 0x5f9   :  { %664 = vrot.lane.b32.xlu0 %v1353_v51, %s1273_s27 }
 0x648   :  { %v589_v58 = vpop.xlane.xlu0 %588 }
 0x649   :  { %v590_v59 = vsub.f32 %v584_v49, %v589_v58 }
 0x64b   :  { %v591_v60 = vmul.f32 1.442695, %v590_v59 }
 0x64d   :  { %1141 = vpow2.f32 %v591_v60 }
 0x650   :  { %v720_v61 = vpop.xlane.xlu0 %719 }
 0x651   :  { %v721_v62 = vsub.f32 %v715_v52, %v720_v61 }
 0x653   :  { %v1142_v63 = vpop.eup %1141  ;;  %v722_v0 = vmul.f32 1.442695, %v721_v62 }
 0x654   :  { %1085 = vmatmul.msk.f32.vlgmr.msra.gmra.mxu0 %vm195_vm1, %v1142_v63  ;;  %v593_v1 = vsel %vm195_vm1, %v1142_v63, 0.0 }
 0x655   :  { %1143 = vpow2.f32 %v722_v0  ;;  %594 = vadd.xlane.f32.xlu2 %v593_v1 }
 0x658   :  { %v784_v9 = vpop.xlane.xlu1 %783  ;;  %v653_v3 = vpop.xlane.xlu0 %652 }
 0x659   :  { %v785_v4 = vsub.f32 %v779_v55, %v784_v9  ;;  %v654_v5 = vsub.f32 %v648_v53, %v653_v3  ;;  %v1116_v55 = vld [vmem:[#allocation7 + $0xe8] ss:$0 sm:$0xff] }
 0x65b   :  { %v1144_v14 = vpop.eup %1143  ;;  %v786_v51 = vmul.f32 1.442695, %v785_v4  ;;  %v655_v6 = vmul.f32 1.442695, %v654_v5 }
 0x65c   :  { %1091 = vmatmul.msk.f32.vlgmr.msrb.gmra.mxu2 %vm195_vm1, %v1144_v14  ;;  %v724_v7 = vsel %vm195_vm1, %v1144_v14, 0.0 }
 0x65d   :  { %1145 = vpow2.f32 %v786_v51  ;;  %725 = vadd.xlane.f32.xlu1 %v724_v7  ;;  %v912_v7 = vld [vmem:[#allocation7 + $0x100] sm:$0xff] }
 0x65e   :  { %1147 = vpow2.f32 %v655_v6 }
 0x663   :  { %v1146_v8 = vpop.eup %1145 }
 0x664   :  { %v1148_v10 = vpop.eup %1147  ;;  %v788_v11 = vsel %vm195_vm1, %v1146_v8, 0.0 }
 0x665   :  { %789 = vadd.xlane.f32.xlu1 %v788_v11  ;;  %v657_v12 = vsel %vm195_vm1, %v1148_v10, 0.0 }
 0x666   :  { %658 = vadd.xlane.f32.xlu0 %v657_v12 }
 0x66b   :  { %v665_v13 = vpop.permute.xlu0 %664 }
 0x66c   :  { %685 = vmatpush.msrb.mxu0 %v665_v13 }
 0x66d   :  { %1088 = vmatmul.msk.f32.vlgmr.msrb.gmra.mxu0 %vm195_vm1, %v1148_v10  ;;  %v910_v10 = vld [vmem:[#allocation7 + $0xf0] sm:$0xff] }
 0x66e   :  { %816 = vmatpush.msra.mxu0 %v796_v15  ;;  %v954_v15 = vld [vmem:[#allocation7 + $0x150] sm:$0xff] }
 0x66f   :  { %972 = vmatpush.msra.mxu3 %v954_v15 }
 0x671   :  { %973 = vmatpush.msra.mxu3 %v953_v16 }
 0x673   :  { %974 = vmatpush.msra.mxu3 %v952_v17 }
 0x675   :  { %1094 = vmatmul.msk.f32.vlgmr.msra.gmra.mxu0 %vm195_vm1, %v1146_v8  ;;  %v911_v8 = vld [vmem:[#allocation7 + $0xf8] sm:$0xff] }
 0x6c8   :  { %v595_v20 = vpop.xlane.xlu2 %594 }
 0x6c9   :  { %1149 = vrcp.f32 %v595_v20 }
 0x6cf   :  { %v1150_v24 = vpop.eup %1149 }
 0x6d0   :  { %v726_v21 = vpop.xlane.xlu1 %725  ;;  %v597_v30 = vmul.f32 %v1150_v24, %v595_v20  ;;  %v951_v20 = vld [vmem:[#allocation7 + $0x138] sm:$0xff] }
 0x6d1   :  { %v623_v29 = vpop.f32.mrf.mxu0  ;;  %975 = vmatpush.msra.mxu3 %v951_v20 }
 0x6d2   :  { %v598_v31 = vsub.f32 2.0, %v597_v30 }
 0x6d4   :  { %v599_v35 = vmul.f32 %v1150_v24, %v598_v31  ;;  %v950_v24 = vld [vmem:[#allocation7 + $0x130] sm:$0xff] }
 0x6d5   :  { %976 = vmatpush.msra.mxu3 %v950_v24 }
 0x6d6   :  { %v626_v41 = vmul.f32 %v623_v29, %v599_v35 }
 0x6d8   :  { %v790_v25 = vpop.xlane.xlu1 %789 }
 0x6d9   :  { %v659_v22 = vpop.xlane.xlu0 %658 }
 0x6da   :  { %1151 = vrcp.f32 %v659_v22 }
 0x6db   :  { %1153 = vrcp.f32 %v726_v21 }
 0x6dc   :  { %1155 = vrcp.f32 %v790_v25 }
 0x6df   :  { %v754_v47 = vpop.f32.mrf.mxu2 }
 0x6e0   :  { %v1152_v26 = vpop.eup %1151 }
 0x6e1   :  { %v661_v28 = vmul.f32 %v1152_v26, %v659_v22  ;;  %v1154_v32 = vpop.eup %1153 }
 0x6e2   :  { %v1156_v34 = vpop.eup %1155  ;;  %v728_v36 = vmul.f32 %v1154_v32, %v726_v21 }
 0x6e3   :  { %v662_v33 = vsub.f32 2.0, %v661_v28  ;;  %v792_v38 = vmul.f32 %v1156_v34, %v790_v25 }
 0x6e4   :  { %v729_v44 = vsub.f32 2.0, %v728_v36 }
 0x6e5   :  { %v663_v39 = vmul.f32 %v1152_v26, %v662_v33  ;;  %v793_v45 = vsub.f32 2.0, %v792_v38  ;;  %v904_v33 = vperm.slane %v1397_v23, 1  ;;  %v907_v38 = vperm.slane %v1399_v27, 1 }
 0x6e6   :  { %v730_v48 = vmul.f32 %v1154_v32, %v729_v44 }
 0x6e7   :  { %v794_v49 = vmul.f32 %v1156_v34, %v793_v45 }
 0x6e8   :  { %v757_v52 = vmul.f32 %v754_v47, %v730_v48 }
 0x6ea   :  { %v687_v40 = vpop.f32.mrf.mxu0 }
 0x6eb   :  { %v690_v43 = vmul.f32 %v687_v40, %v663_v39 }
 0x6ed   :  { %v691_v46 = vadd.f32 %v690_v43, %v626_v41 }
 0x6ef   :  { %1095 = vmatmul.msk.f32.vlgmr.msra.gmra.mxu1 %vm75_vm0, %v691_v46 }
 0x6f2   :  { %v818_v50 = vpop.f32.mrf.mxu0 }
 0x6f3   :  { %v821_v53 = vmul.f32 %v818_v50, %v794_v49  ;;  %v949_v49 = vld [vmem:[#allocation7 + $0x128] sm:$0xff]  ;;  %v948_v50 = vld [vmem:[#allocation7 + $0x120] sm:$0xff] }
 0x6f4   :  { %977 = vmatpush.msra.mxu3 %v949_v49 }
 0x6f5   :  { %v822_v54 = vadd.f32 %v821_v53, %v757_v52  ;;  %v947_v52 = vld [vmem:[#allocation7 + $0x118] sm:$0xff]  ;;  %v1117_v53 = vld [vmem:[#allocation7 + $0x110] ss:$0 sm:$0xff] }
 0x6f6   :  { %978 = vmatpush.msra.mxu3 %v948_v50 }
 0x6f7   :  { %1096 = vmatmul.msk.f32.gmra.mxu1 %vm75_vm0, %v822_v54 }
 0x6f8   :  { %979 = vmatpush.msra.mxu3 %v947_v52 }
 0x76c   :  { %v852_v56 = vpop.f32.mrf.mxu1 }
 0x76d   :  { %v853_v57 = vadd.f32 %v1116_v55, %v852_v56 }
 0x76f   :  { %v858_v58 = vadd.f32 %v853_v57, %v1403_v37 }
 0x771   :  { %v860_v59 = vsel %vm75_vm0, %v858_v58, 0.0 }
 0x772   :  { %861 = vadd.xlane.f32.xlu1 %v860_v59 }
 0x774   :  { %v855_v60 = vpop.f32.mrf.mxu1 }
 0x775   :  { %v856_v61 = vadd.f32 %v1116_v55, %v855_v60  ;;  %v1118_v60 = vld [vmem:[#allocation7 + $0x158] ss:$0 sm:$0xff] }
 0x777   :  { %v859_v62 = vadd.f32 %v856_v61, %v1407_v42  ;;  %v913_v42 = vld [vmem:[#allocation7 + $0x108] sm:$0xff] }
 0x778   :  { %934 = vmatpush.msra.mxu2 %v913_v42 }
 0x779   :  { %v863_v63 = vsel %vm75_vm0, %v859_v62, 0.0 }
 0x77a   :  { %864 = vadd.xlane.f32.xlu2 %v863_v63  ;;  %935 = vmatpush.msra.mxu2 %v912_v7 }
 0x77c   :  { %936 = vmatpush.msra.mxu2 %v911_v8 }
 0x77e   :  { %937 = vmatpush.msra.mxu2 %v910_v10 }
 0x7e5   :  { %v862_v0 = vpop.xlane.xlu1 %861 }
 0x7e6   :  { %v866_v1 = vmul.f32 %v862_v0, %v1387_v2 }
 0x7e8   :  { %v868_v9 = vsub.f32 %v858_v58, %v866_v1 }
 0x7ea   :  { %v870_v3 = vmul.f32 %v868_v9, %v868_v9 }
 0x7ec   :  { %v872_v4 = vsel %vm75_vm0, %v870_v3, 0.0 }
 0x7ed   :  { %v865_v5 = vpop.xlane.xlu2 %864  ;;  %873 = vadd.xlane.f32.xlu0 %v872_v4 }
 0x7ee   :  { %v867_v37 = vmul.f32 %v865_v5, %v1387_v2 }
 0x7f0   :  { %v869_v14 = vsub.f32 %v859_v62, %v867_v37 }
 0x7f2   :  { %v871_v51 = vmul.f32 %v869_v14, %v869_v14 }
 0x7f4   :  { %v875_v6 = vsel %vm75_vm0, %v871_v51, 0.0 }
 0x7f5   :  { %876 = vadd.xlane.f32.xlu1 %v875_v6 }
 0x860   :  { %v874_v11 = vpop.xlane.xlu0 %873 }
 0x861   :  { %v878_v12 = vmul.f32 %v874_v11, %v1387_v2 }
 0x863   :  { %v880_v13 = vadd.f32 1e-05, %v878_v12 }
 0x865   :  { %1157 = vrsqrt.f32 %v880_v13  ;;  %vm888_vm10 = vweird.f32 %v880_v13 }
 0x868   :  { %v877_v18 = vpop.xlane.xlu1 %876 }
 0x869   :  { %v879_v19 = vmul.f32 %v877_v18, %v1387_v2 }
 0x86b   :  { %v1158_v21 = vpop.eup %1157  ;;  %v881_v22 = vadd.f32 1e-05, %v879_v19 }
 0x86c   :  { %v883_v25 = vmul.f32 %v1158_v21, %v880_v13  ;;  %vm889_vm9 = vweird.f32 %v1158_v21 }
 0x86d   :  { %1159 = vrsqrt.f32 %v881_v22  ;;  %vm890_vm11 = vmor %vm888_vm10, %vm889_vm9  ;;  %vm898_vm13 = vweird.f32 %v881_v22 }
 0x86e   :  { %v884_v30 = vmul.f32 %v1158_v21, %v883_v25 }
 0x870   :  { %v885_v26 = vmul.f32 0.5, %v884_v30 }
 0x872   :  { %v886_v28 = vsub.f32 1.5, %v885_v26 }
 0x873   :  { %v1160_v29 = vpop.eup %1159 }
 0x874   :  { %v887_v31 = vmul.f32 %v1158_v21, %v886_v28  ;;  %v893_v32 = vmul.f32 %v1160_v29, %v881_v22  ;;  %vm899_vm12 = vweird.f32 %v1160_v29  ;;  %v1033_v28 = vperm.slane %v1397_v23, 2 }
 0x875   :  { %vm900_vm14 = vmor %vm898_vm13, %vm899_vm12 }
 0x876   :  { %v891_v34 = vsel %vm890_vm11, %v1158_v21, %v887_v31  ;;  %v894_v35 = vmul.f32 %v1160_v29, %v893_v32 }
 0x877   :  { %v902_v36 = vmul.f32 %v891_v34, %v868_v9 }
 0x878   :  { %v895_v39 = vmul.f32 0.5, %v894_v35 }
 0x879   :  { %v905_v40 = vmul.f32 %v904_v33, %v902_v36 }
 0x87a   :  { %v896_v41 = vsub.f32 1.5, %v895_v39 }
 0x87b   :  { %v908_v43 = vadd.f32 %v907_v38, %v905_v40 }
 0x87c   :  { %v897_v44 = vmul.f32 %v1160_v29, %v896_v41 }
 0x87d   :  { %1097 = vmatmul.msk.f32.vlgmr.msra.gmra.mxu2 %vm75_vm0, %v908_v43 }
 0x87e   :  { %v901_v45 = vsel %vm900_vm14, %v1160_v29, %v897_v44 }
 0x87f   :  { %v903_v46 = vmul.f32 %v901_v45, %v869_v14 }
 0x881   :  { %v906_v47 = vmul.f32 %v904_v33, %v903_v46 }
 0x883   :  { %v909_v48 = vadd.f32 %v907_v38, %v906_v47 }
 0x885   :  { %1098 = vmatmul.msk.f32.gmra.mxu2 %vm75_vm0, %v909_v48 }
 0x900   :  { %v939_v54 = vpop.f32.mrf.mxu2 }
 0x901   :  { %v940_v55 = vadd.f32 %v1117_v53, %v939_v54 }
 0x903   :  { %v945_v56 = vmax.f32 %v940_v55, 0.0 }
 0x905   :  { %1099 = vmatmul.msk.f32.vlgmr.msra.gmra.mxu3 %vm957_vm15, %v945_v56 }
 0x908   :  { %v942_v57 = vpop.f32.mrf.mxu2 }
 0x909   :  { %v943_v58 = vadd.f32 %v1117_v53, %v942_v57 }
 0x90b   :  { %v946_v59 = vmax.f32 %v943_v58, 0.0 }
 0x90d   :  { %1100 = vmatmul.msk.f32.gmra.mxu3 %vm957_vm15, %v946_v59 }
 0x988   :  { %v981_v61 = vpop.f32.mrf.mxu3 }
 0x989   :  { %v982_v62 = vadd.f32 %v1118_v60, %v981_v61 }
 0x98b   :  { %v987_v63 = vadd.f32 %v982_v62, %v908_v43 }
 0x98d   :  { %v989_v0 = vsel %vm75_vm0, %v987_v63, 0.0 }
 0x98e   :  { %990 = vadd.xlane.f32.xlu2 %v989_v0 }
 0x990   :  { %v984_v1 = vpop.f32.mrf.mxu3 }
 0x991   :  { %v985_v9 = vadd.f32 %v1118_v60, %v984_v1 }
 0x993   :  { %v988_v3 = vadd.f32 %v985_v9, %v909_v48 }
 0x995   :  { %v992_v4 = vsel %vm75_vm0, %v988_v3, 0.0 }
 0x996   :  { %993 = vadd.xlane.f32.xlu0 %v992_v4 }
 0xa01   :  { %v991_v5 = vpop.xlane.xlu2 %990 }
 0xa02   :  { %v995_v37 = vmul.f32 %v991_v5, %v1387_v2 }
 0xa04   :  { %v997_v14 = vsub.f32 %v987_v63, %v995_v37 }
 0xa06   :  { %v999_v51 = vmul.f32 %v997_v14, %v997_v14 }
 0xa08   :  { %v1001_v6 = vsel %vm75_vm0, %v999_v51, 0.0 }
 0xa09   :  { %1002 = vadd.xlane.f32.xlu1 %v1001_v6  ;;  %v994_v42 = vpop.xlane.xlu0 %993 }
 0xa0a   :  { %v996_v7 = vmul.f32 %v994_v42, %v1387_v2 }
 0xa0c   :  { %v998_v8 = vsub.f32 %v988_v3, %v996_v7 }
 0xa0e   :  { %v1000_v10 = vmul.f32 %v998_v8, %v998_v8 }
 0xa10   :  { %v1004_v11 = vsel %vm75_vm0, %v1000_v10, 0.0 }
 0xa11   :  { %1005 = vadd.xlane.f32.xlu2 %v1004_v11 }
 0xa7c   :  { %v1003_v12 = vpop.xlane.xlu1 %1002 }
 0xa7d   :  { %v1007_v13 = vmul.f32 %v1003_v12, %v1387_v2 }
 0xa7f   :  { %v1009_v15 = vadd.f32 1e-05, %v1007_v13 }
 0xa81   :  { %1161 = vrsqrt.f32 %v1009_v15  ;;  %vm1017_vm2 = vweird.f32 %v1009_v15 }
 0xa84   :  { %v1006_v16 = vpop.xlane.xlu2 %1005 }
 0xa85   :  { %v1008_v17 = vmul.f32 %v1006_v16, %v1387_v2  ;;  %v1036_v2 = vperm.slane %v1399_v27, 2 }
 0xa87   :  { %v1162_v18 = vpop.eup %1161  ;;  %v1010_v19 = vadd.f32 1e-05, %v1008_v17 }
 0xa88   :  { %v1012_v20 = vmul.f32 %v1162_v18, %v1009_v15  ;;  %vm1018_vm1 = vweird.f32 %v1162_v18 }
 0xa89   :  { %1163 = vrsqrt.f32 %v1010_v19  ;;  %vm1019_vm3 = vmor %vm1017_vm2, %vm1018_vm1  ;;  %vm1027_vm5 = vweird.f32 %v1010_v19 }
 0xa8a   :  { %v1013_v21 = vmul.f32 %v1162_v18, %v1012_v20 }
 0xa8c   :  { %v1014_v22 = vmul.f32 0.5, %v1013_v21 }
 0xa8e   :  { %v1015_v24 = vsub.f32 1.5, %v1014_v22 }
 0xa8f   :  { %v1164_v25 = vpop.eup %1163 }
 0xa90   :  { %v1016_v30 = vmul.f32 %v1162_v18, %v1015_v24  ;;  %v1022_v26 = vmul.f32 %v1164_v25, %v1010_v19  ;;  %vm1028_vm4 = vweird.f32 %v1164_v25 }
 0xa91   :  { %vm1029_vm6 = vmor %vm1027_vm5, %vm1028_vm4 }
 0xa92   :  { %v1020_v29 = vsel %vm1019_vm3, %v1162_v18, %v1016_v30  ;;  %v1023_v31 = vmul.f32 %v1164_v25, %v1022_v26 }
 0xa93   :  { %v1031_v32 = vmul.f32 %v1020_v29, %v997_v14 }
 0xa94   :  { %v1024_v33 = vmul.f32 0.5, %v1023_v31 }
 0xa95   :  { %v1034_v34 = vmul.f32 %v1033_v28, %v1031_v32 }
 0xa96   :  { %v1025_v35 = vsub.f32 1.5, %v1024_v33 }
 0xa97   :  { %v1037_v36 = vadd.f32 %v1036_v2, %v1034_v34 }
 0xa98   :  { %v1026_v38 = vmul.f32 %v1164_v25, %v1025_v35 }
 0xa99   :  { %1039 = vst.msk [vmem:[#allocation8] sm:$0xff] %vm75_vm0, %v1037_v36 }
 0xa9a   :  { %v1030_v39 = vsel %vm1029_vm6, %v1164_v25, %v1026_v38 }
 0xa9b   :  { %v1032_v40 = vmul.f32 %v1030_v39, %v998_v8 }
 0xa9d   :  { %v1035_v23 = vmul.f32 %v1033_v28, %v1032_v40 }
 0xa9f   :  { %v1038_v27 = vadd.f32 %v1036_v2, %v1035_v23 }
 0xaa1   :  { %1040 = vst.msk [vmem:[#allocation8 + $0x8] sm:$0xff] %vm75_vm0, %v1038_v27 }
 0xaa2   :  { %1053 = dma.vmem_to_hbm [thread:$0]  %s1046_s30, 256, %s1048_s6, [#allocation4], %s1268_s20, %s1268_s20, %s1269_s21  }
 0xaa3   :  { %1265 = dma.done.wait [#allocation4], 256  }
 0xaa4   :  { %1266 = vsyncadd [#allocation4], 4294967040 }
 0xaa5   :  { %1058 = vsyncpa [#allocation3], 1 }
 0xaa6   :  { %1059 = vsyncpa [#allocation6], 1 }
 0xaa7   :  { %1060 = vsyncpa [#allocation4], 1 }

</bundles_post_ra>
